<compile_context>
chip_gen: v7x
topology: tpu7x:2x2x1
jax: 0.10.0
libtpu: 0.0.40
codegen_flags: <defaults>
</compile_context>

<pallas_src>
from functools import partial

import jax
import jax.numpy as jnp
from jax.experimental import pallas as pl
from jax.experimental.pallas import tpu as pltpu


def _round_up(x, m):
    return ((x + m - 1) // m) * m


def _choose_batch_block(batch):
    """MXU/pipeline-friendly batch tile: multiple of 8 (ideally 128), >= 2 grid
    steps when the batch allows it, capped at 512 rows to stay VMEM-friendly."""
    if batch <= 128:
        return _round_up(max(batch, 8), 8)
    tb = min(512, (batch // 2) // 128 * 128)
    return max(tb, 128)


def _tabular_encoder_kernel(x_ref, w_in_ref, b_in_ref, w_hid_ref, b_hid_ref,
                            w_out_ref, b_out_ref, o_ref, *,
                            num_layers, residual, compute_dtype):
    """Fused encoder: linear_in -> L * (linear [+res] -> relu) -> linear_out.

    Matmul operands are cast to `compute_dtype` (bf16 by default); accumulation,
    bias adds, ReLU and the residual add stay in float32.
    """
    h = jnp.dot(x_ref[...].astype(compute_dtype), w_in_ref[...],
                preferred_element_type=jnp.float32) + b_in_ref[...]
    for layer in range(num_layers):                 # small, statically unrolled
        z = jnp.dot(h.astype(compute_dtype), w_hid_ref[layer],
                    preferred_element_type=jnp.float32) + b_hid_ref[layer]
        if residual:
            z = z + h                               # identity added before ReLU
        h = jnp.maximum(z, 0.0)                     # F.relu
    out = jnp.dot(h.astype(compute_dtype), w_out_ref[...],
                  preferred_element_type=jnp.float32) + b_out_ref[...]
    o_ref[...] = out.astype(o_ref.dtype)


def tabular_encoder_forward(x, params, *, residual=False, batch_block=None,
                            use_bf16_matmul=True):
    """Fused TabularEncoder forward as a single pallas_call.

    params = (w_in, b_in, w_hid, b_hid, w_out, b_out) with shapes
      w_in  : (input_dim, hidden)      b_in  : (1, hidden)
      w_hid : (L, hidden, hidden)      b_hid : (L, 1, hidden)
      w_out : (hidden, output_dim)     b_out : (1, output_dim)
    (weights stored pre-transposed so the kernel computes x @ W on the MXU)
    """
    w_in, b_in, w_hid, b_hid, w_out, b_out = params
    B, in_dim = x.shape
    hidden = w_in.shape[1]
    out_dim = w_out.shape[1]
    num_layers = int(w_hid.shape[0])
    out_dtype = x.dtype

    # ---- lane padding: make every last dim a multiple of 128 (zeros => exact) ----
    in_p = _round_up(in_dim, 128)
    hid_p = _round_up(hidden, 128)
    out_p = _round_up(out_dim, 128)

    compute_dtype = jnp.bfloat16 if use_bf16_matmul else jnp.float32

    w_in_p = jnp.pad(w_in, ((0, in_p - in_dim), (0, hid_p - hidden))
                     ).astype(compute_dtype)
    b_in_p = jnp.pad(b_in, ((0, 0), (0, hid_p - hidden))).astype(jnp.float32)
    w_hid_p = jnp.pad(w_hid, ((0, 0), (0, hid_p - hidden), (0, hid_p - hidden))
                      ).astype(compute_dtype)
    b_hid_p = jnp.pad(b_hid, ((0, 0), (0, 0), (0, hid_p - hidden))
                      ).astype(jnp.float32)
    w_out_p = jnp.pad(w_out, ((0, hid_p - hidden), (0, out_p - out_dim))
                      ).astype(compute_dtype)
    b_out_p = jnp.pad(b_out, ((0, 0), (0, out_p - out_dim))).astype(jnp.float32)

    # ---- batch tiling: multi-step grid => pipelining + v7x dual-TC sharding ----
    tb = batch_block if batch_block is not None else _choose_batch_block(B)
    tb = max(8, _round_up(tb, 8))
    B_p = _round_up(B, tb)
    x_p = jnp.pad(x, ((0, B_p - B), (0, in_p - in_dim)))
    grid = (B_p // tb,)

    kernel = partial(_tabular_encoder_kernel, num_layers=num_layers,
                     residual=residual, compute_dtype=compute_dtype)

    # ---- cost / VMEM bookkeeping ----
    itemsize_w = jnp.dtype(compute_dtype).itemsize
    weight_elems = in_p * hid_p + num_layers * hid_p * hid_p + hid_p * out_p
    weight_bytes = weight_elems * itemsize_w
    bias_bytes = (hid_p * (num_layers + 1) + out_p) * 4
    flops = 2 * B_p * weight_elems
    bytes_accessed = int(B_p * in_p * x.dtype.itemsize
                         + B_p * out_p * jnp.dtype(out_dtype).itemsize
                         + weight_bytes + bias_bytes)
    cost = pl.CostEstimate(flops=int(flops), transcendentals=0,
                           bytes_accessed=bytes_accessed)

    # double-buffered x/out tiles + resident weights + a few (tb, hid_p) f32 temps
    est_vmem = (2 * tb * (in_p + out_p) * 4 + 2 * weight_bytes + bias_bytes
                + 4 * tb * hid_p * 4)
    vmem_limit = int(min(max(2 * est_vmem, 32 * 2 ** 20), 100 * 2 ** 20))

    def build(single_buffer_weights):
        def const_spec(shape):
            n = len(shape)
            zero_map = lambda i: (0,) * n
            if single_buffer_weights:
                return pl.BlockSpec(shape, zero_map, pipeline_mode=pl.Buffered(1))
            return pl.BlockSpec(shape, zero_map)

        return pl.pallas_call(
            kernel,
            out_shape=jax.ShapeDtypeStruct((B_p, out_p), out_dtype),
            grid=grid,
            in_specs=[
                pl.BlockSpec((tb, in_p), lambda i: (i, 0)),        # x batch tile
                const_spec((in_p, hid_p)),                         # W_in (resident)
                const_spec((1, hid_p)),                            # b_in
                const_spec((num_layers, hid_p, hid_p)),            # stacked hidden W
                const_spec((num_layers, 1, hid_p)),                # stacked hidden b
                const_spec((hid_p, out_p)),                        # W_out
                const_spec((1, out_p)),                            # b_out
            ],
            out_specs=pl.BlockSpec((tb, out_p), lambda i: (i, 0)),  # lane-dense out
            compiler_params=pltpu.CompilerParams(
                dimension_semantics=("parallel",),
                vmem_limit_bytes=vmem_limit),
            cost_estimate=cost,
        )

    args = (x_p, w_in_p, b_in_p, w_hid_p, b_hid_p, w_out_p, b_out_p)
    try:
        out_padded = build(True)(*args)    # single-buffered resident weights
    except Exception:
        out_padded = build(False)(*args)   # fallback: default double-buffering

    return out_padded[:B, :out_dim]


def init_params(key, input_dim, hidden_dims, output_dim, dtype=jnp.float32):
    """Deterministic nn.Linear-style init: U(-1/sqrt(fan_in), 1/sqrt(fan_in)).

    Weights are stored already transposed to (in, out) so the kernel does x @ W.
    All hidden blocks operate at hidden_dims[0] (matches the PyTorch module,
    which builds len(hidden_dims) blocks of width hidden_dims[0]).
    """
    hidden = hidden_dims[0]
    num_layers = len(hidden_dims)
    keys = jax.random.split(key, 2 * (num_layers + 2))

    def linear(kw, kb, fan_in, fan_out):
        bound = 1.0 / jnp.sqrt(jnp.asarray(fan_in, dtype))
        w = jax.random.uniform(kw, (fan_in, fan_out), dtype, -bound, bound)
        b = jax.random.uniform(kb, (1, fan_out), dtype, -bound, bound)
        return w, b

    w_in, b_in = linear(keys[0], keys[1], input_dim, hidden)
    w_hid, b_hid = [], []
    for l in range(num_layers):
        w, b = linear(keys[2 + 2 * l], keys[3 + 2 * l], hidden, hidden)
        w_hid.append(w)
        b_hid.append(b[None])                     # -> (1, 1, hidden)
    w_hid = jnp.stack(w_hid, axis=0)              # (L, hidden, hidden)
    b_hid = jnp.concatenate(b_hid, axis=0)        # (L, 1, hidden)
    w_out, b_out = linear(keys[-2], keys[-1], hidden, output_dim)
    return (w_in, b_in, w_hid, b_hid, w_out, b_out)


def reference_forward(x, params, *, residual=False, compute_dtype=jnp.float32):
    """Plain-JAX reference mirroring the PyTorch forward (sanity check)."""
    w_in, b_in, w_hid, b_hid, w_out, b_out = params
    cd = compute_dtype
    h = jnp.dot(x.astype(cd), w_in.astype(cd),
                preferred_element_type=jnp.float32) + b_in
    for l in range(w_hid.shape[0]):
        z = jnp.dot(h.astype(cd), w_hid[l].astype(cd),
                    preferred_element_type=jnp.float32) + b_hid[l]
        if residual:
            z = z + h
        h = jnp.maximum(z, 0.0)
    return jnp.dot(h.astype(cd), w_out.astype(cd),
                   preferred_element_type=jnp.float32) + b_out


if __name__ == "__main__":
    # Small shapes consistent with the module; batch deliberately not a
    # multiple of the tile to exercise the wrapper's pad-and-slice path.
    batch = 200
    input_dim = 16
    hidden_dims = [32, 32]   # two _TabularBlock's, both at width 32
    output_dim = 8
    residual = False         # module default

    key = jax.random.PRNGKey(0)
    k_x, k_p = jax.random.split(key)
    x = jax.random.normal(k_x, (batch, input_dim), dtype=jnp.float32)
    params = init_params(k_p, input_dim, hidden_dims, output_dim)

    # Exact f32 path vs exact f32 reference (validates semantics).
    out_f32 = jax.block_until_ready(
        tabular_encoder_forward(x, params, residual=residual,
                                use_bf16_matmul=False))
    ref_f32 = reference_forward(x, params, residual=residual)
    assert out_f32.shape == (batch, output_dim)
    assert jnp.allclose(out_f32, ref_f32, atol=1e-4, rtol=1e-4), \
        "f32 kernel mismatch vs reference"

    # Default fast path: bf16 matmul operands, f32 accumulation.
    out_bf16 = jax.block_until_ready(
        tabular_encoder_forward(x, params, residual=residual,
                                use_bf16_matmul=True))
    ref_bf16 = reference_forward(x, params, residual=residual,
                                 compute_dtype=jnp.bfloat16)
    assert out_bf16.shape == (batch, output_dim)
    assert jnp.allclose(out_bf16, ref_bf16, atol=1e-2, rtol=1e-2), \
        "bf16 kernel mismatch vs bf16 reference"

    print("KERNEL_OK")
</pallas_src>

<mosaic_0001>
module attributes {stable_mosaic.version = 11 : i64} {
  func.func @_tabular_encoder_kernel(%arg0: i32, %arg1: memref<128x128xf32, #tpu.memory_space<vmem>>, %arg2: memref<128x128xf32, #tpu.memory_space<vmem>>, %arg3: memref<1x128xf32, #tpu.memory_space<vmem>>, %arg4: memref<2x128x128xf32, #tpu.memory_space<vmem>>, %arg5: memref<2x1x128xf32, #tpu.memory_space<vmem>>, %arg6: memref<128x128xf32, #tpu.memory_space<vmem>>, %arg7: memref<1x128xf32, #tpu.memory_space<vmem>>, %arg8: memref<128x128xf32, #tpu.memory_space<vmem>>) attributes {dimension_semantics = [#tpu.dimension_semantics<parallel>], iteration_bounds = array<i64: 2>, scalar_prefetch = 0 : i64, scratch_operands = 0 : i64, tpu.core_type = #tpu.core_type<tc>, window_params = [{transform_indices = @transform_0, window_bounds = array<i64: 128, 128>}, {pipeline_mode = #tpu.pipeline_mode<synchronous>, transform_indices = @transform_1, window_bounds = array<i64: 128, 128>}, {pipeline_mode = #tpu.pipeline_mode<synchronous>, transform_indices = @transform_2, window_bounds = array<i64: 1, 128>}, {pipeline_mode = #tpu.pipeline_mode<synchronous>, transform_indices = @transform_3, window_bounds = array<i64: 2, 128, 128>}, {pipeline_mode = #tpu.pipeline_mode<synchronous>, transform_indices = @transform_4, window_bounds = array<i64: 2, 1, 128>}, {pipeline_mode = #tpu.pipeline_mode<synchronous>, transform_indices = @transform_5, window_bounds = array<i64: 128, 128>}, {pipeline_mode = #tpu.pipeline_mode<synchronous>, transform_indices = @transform_6, window_bounds = array<i64: 1, 128>}, {transform_indices = @transform_7, window_bounds = array<i64: 128, 128>}]} {
    %c0 = arith.constant 0 : index
    %c0_0 = arith.constant 0 : index
    %0 = vector.load %arg1[%c0, %c0_0] : memref<128x128xf32, #tpu.memory_space<vmem>>, vector<128x128xf32>
    %c0_1 = arith.constant 0 : index
    %c0_2 = arith.constant 0 : index
    %1 = vector.load %arg2[%c0_1, %c0_2] : memref<128x128xf32, #tpu.memory_space<vmem>>, vector<128x128xf32>
    %cst = arith.constant dense<0.000000e+00> : vector<128x128xf32>
    %2 = tpu.matmul %0, %1, %cst {dimension_numbers = #tpu.dot_dimension_numbers<[1], [0], [0], [1], [0, 0, 1, 1], [], []>} : vector<128x128xf32>, vector<128x128xf32>, vector<128x128xf32> -> vector<128x128xf32>
    %c0_3 = arith.constant 0 : index
    %c0_4 = arith.constant 0 : index
    %3 = vector.load %arg3[%c0_3, %c0_4] : memref<1x128xf32, #tpu.memory_space<vmem>>, vector<1x128xf32>
    %4 = vector.broadcast %3 : vector<1x128xf32> to vector<128x128xf32>
    %5 = arith.addf %2, %4 : vector<128x128xf32>
    %c0_5 = arith.constant 0 : index
    %c0_6 = arith.constant 0 : index
    %c0_7 = arith.constant 0 : index
    %6 = vector.load %arg4[%c0_5, %c0_6, %c0_7] : memref<2x128x128xf32, #tpu.memory_space<vmem>>, vector<1x128x128xf32>
    %7 = vector.shape_cast %6 : vector<1x128x128xf32> to vector<128x128xf32>
    %cst_8 = arith.constant dense<0.000000e+00> : vector<128x128xf32>
    %8 = tpu.matmul %5, %7, %cst_8 {dimension_numbers = #tpu.dot_dimension_numbers<[1], [0], [0], [1], [0, 0, 1, 1], [], []>} : vector<128x128xf32>, vector<128x128xf32>, vector<128x128xf32> -> vector<128x128xf32>
    %c0_9 = arith.constant 0 : index
    %c0_10 = arith.constant 0 : index
    %c0_11 = arith.constant 0 : index
    %9 = vector.load %arg5[%c0_9, %c0_10, %c0_11] : memref<2x1x128xf32, #tpu.memory_space<vmem>>, vector<1x1x128xf32>
    %10 = vector.shape_cast %9 : vector<1x1x128xf32> to vector<1x128xf32>
    %11 = vector.broadcast %10 : vector<1x128xf32> to vector<128x128xf32>
    %12 = arith.addf %8, %11 : vector<128x128xf32>
    %cst_12 = arith.constant 0.000000e+00 : f32
    %13 = vector.broadcast %cst_12 : f32 to vector<128x128xf32>
    %14 = arith.maximumf %12, %13 : vector<128x128xf32>
    %c1 = arith.constant 1 : index
    %c0_13 = arith.constant 0 : index
    %c0_14 = arith.constant 0 : index
    %15 = vector.load %arg4[%c1, %c0_13, %c0_14] : memref<2x128x128xf32, #tpu.memory_space<vmem>>, vector<1x128x128xf32>
    %16 = vector.shape_cast %15 : vector<1x128x128xf32> to vector<128x128xf32>
    %cst_15 = arith.constant dense<0.000000e+00> : vector<128x128xf32>
    %17 = tpu.matmul %14, %16, %cst_15 {dimension_numbers = #tpu.dot_dimension_numbers<[1], [0], [0], [1], [0, 0, 1, 1], [], []>} : vector<128x128xf32>, vector<128x128xf32>, vector<128x128xf32> -> vector<128x128xf32>
    %c1_16 = arith.constant 1 : index
    %c0_17 = arith.constant 0 : index
    %c0_18 = arith.constant 0 : index
    %18 = vector.load %arg5[%c1_16, %c0_17, %c0_18] : memref<2x1x128xf32, #tpu.memory_space<vmem>>, vector<1x1x128xf32>
    %19 = vector.shape_cast %18 : vector<1x1x128xf32> to vector<1x128xf32>
    %20 = vector.broadcast %19 : vector<1x128xf32> to vector<128x128xf32>
    %21 = arith.addf %17, %20 : vector<128x128xf32>
    %cst_19 = arith.constant 0.000000e+00 : f32
    %22 = vector.broadcast %cst_19 : f32 to vector<128x128xf32>
    %23 = arith.maximumf %21, %22 : vector<128x128xf32>
    %c0_20 = arith.constant 0 : index
    %c0_21 = arith.constant 0 : index
    %24 = vector.load %arg6[%c0_20, %c0_21] : memref<128x128xf32, #tpu.memory_space<vmem>>, vector<128x128xf32>
    %cst_22 = arith.constant dense<0.000000e+00> : vector<128x128xf32>
    %25 = tpu.matmul %23, %24, %cst_22 {dimension_numbers = #tpu.dot_dimension_numbers<[1], [0], [0], [1], [0, 0, 1, 1], [], []>} : vector<128x128xf32>, vector<128x128xf32>, vector<128x128xf32> -> vector<128x128xf32>
    %c0_23 = arith.constant 0 : index
    %c0_24 = arith.constant 0 : index
    %26 = vector.load %arg7[%c0_23, %c0_24] : memref<1x128xf32, #tpu.memory_space<vmem>>, vector<1x128xf32>
    %27 = vector.broadcast %26 : vector<1x128xf32> to vector<128x128xf32>
    %28 = arith.addf %25, %27 : vector<128x128xf32>
    %c0_25 = arith.constant 0 : index
    %c0_26 = arith.constant 0 : index
    %29 = vector.load %arg8[%c0_25, %c0_26] : memref<128x128xf32, #tpu.memory_space<vmem>>, vector<128x128xf32>
    tpu.vector_store %arg8[%c0_25, %c0_26], %28 {strides = array<i32>} : memref<128x128xf32, #tpu.memory_space<vmem>>, vector<128x128xf32>,
    return
  }
  func.func @transform_0(%arg0: i32) -> (i32, i32) {
    %c0_i32 = arith.constant 0 : i32
    %c0_i32_0 = arith.constant 0 : i32
    return %arg0, %c0_i32 : i32, i32
  }
  func.func @transform_1(%arg0: i32) -> (i32, i32) {
    %c0_i32 = arith.constant 0 : i32
    %c0_i32_0 = arith.constant 0 : i32
    %c0_i32_1 = arith.constant 0 : i32
    return %c0_i32, %c0_i32_0 : i32, i32
  }
  func.func @transform_2(%arg0: i32) -> (i32, i32) {
    %c0_i32 = arith.constant 0 : i32
    %c0_i32_0 = arith.constant 0 : i32
    %c0_i32_1 = arith.constant 0 : i32
    return %c0_i32, %c0_i32_0 : i32, i32
  }
  func.func @transform_3(%arg0: i32) -> (i32, i32, i32) {
    %c0_i32 = arith.constant 0 : i32
    %c0_i32_0 = arith.constant 0 : i32
    %c0_i32_1 = arith.constant 0 : i32
    %c0_i32_2 = arith.constant 0 : i32
    return %c0_i32, %c0_i32_0, %c0_i32_1 : i32, i32, i32
  }
  func.func @transform_4(%arg0: i32) -> (i32, i32, i32) {
    %c0_i32 = arith.constant 0 : i32
    %c0_i32_0 = arith.constant 0 : i32
    %c0_i32_1 = arith.constant 0 : i32
    %c0_i32_2 = arith.constant 0 : i32
    return %c0_i32, %c0_i32_0, %c0_i32_1 : i32, i32, i32
  }
  func.func @transform_5(%arg0: i32) -> (i32, i32) {
    %c0_i32 = arith.constant 0 : i32
    %c0_i32_0 = arith.constant 0 : i32
    %c0_i32_1 = arith.constant 0 : i32
    return %c0_i32, %c0_i32_0 : i32, i32
  }
  func.func @transform_6(%arg0: i32) -> (i32, i32) {
    %c0_i32 = arith.constant 0 : i32
    %c0_i32_0 = arith.constant 0 : i32
    %c0_i32_1 = arith.constant 0 : i32
    return %c0_i32, %c0_i32_0 : i32, i32
  }
  func.func @transform_7(%arg0: i32) -> (i32, i32) {
    %c0_i32 = arith.constant 0 : i32
    %c0_i32_0 = arith.constant 0 : i32
    return %arg0, %c0_i32 : i32, i32
  }
}

module attributes {stable_mosaic.version = 11 : i64} {
  func.func @_tabular_encoder_kernel(%arg0: i32, %arg1: memref<128x128xf32, #tpu.memory_space<vmem>>, %arg2: memref<128x128xf32, #tpu.memory_space<vmem>>, %arg3: memref<1x128xf32, #tpu.memory_space<vmem>>, %arg4: memref<2x128x128xf32, #tpu.memory_space<vmem>>, %arg5: memref<2x1x128xf32, #tpu.memory_space<vmem>>, %arg6: memref<128x128xf32, #tpu.memory_space<vmem>>, %arg7: memref<1x128xf32, #tpu.memory_space<vmem>>, %arg8: memref<128x128xf32, #tpu.memory_space<vmem>>) attributes {dimension_semantics = [#tpu.dimension_semantics<parallel>], iteration_bounds = array<i64: 2>, scalar_prefetch = 0 : i64, scratch_operands = 0 : i64, tpu.core_type = #tpu.core_type<tc>, window_params = [{transform_indices = @transform_0, window_bounds = array<i64: 128, 128>}, {pipeline_mode = #tpu.pipeline_mode<synchronous>, transform_indices = @transform_1, window_bounds = array<i64: 128, 128>}, {pipeline_mode = #tpu.pipeline_mode<synchronous>, transform_indices = @transform_2, window_bounds = array<i64: 1, 128>}, {pipeline_mode = #tpu.pipeline_mode<synchronous>, transform_indices = @transform_3, window_bounds = array<i64: 2, 128, 128>}, {pipeline_mode = #tpu.pipeline_mode<synchronous>, transform_indices = @transform_4, window_bounds = array<i64: 2, 1, 128>}, {pipeline_mode = #tpu.pipeline_mode<synchronous>, transform_indices = @transform_5, window_bounds = array<i64: 128, 128>}, {pipeline_mode = #tpu.pipeline_mode<synchronous>, transform_indices = @transform_6, window_bounds = array<i64: 1, 128>}, {transform_indices = @transform_7, window_bounds = array<i64: 128, 128>}]} {
    %c0 = arith.constant 0 : index
    %c0_0 = arith.constant 0 : index
    %0 = vector.load %arg1[%c0, %c0_0] : memref<128x128xf32, #tpu.memory_space<vmem>>, vector<128x128xf32>
    %c0_1 = arith.constant 0 : index
    %c0_2 = arith.constant 0 : index
    %1 = vector.load %arg2[%c0_1, %c0_2] : memref<128x128xf32, #tpu.memory_space<vmem>>, vector<128x128xf32>
    %cst = arith.constant dense<0.000000e+00> : vector<128x128xf32>
    %2 = tpu.matmul %0, %1, %cst {dimension_numbers = #tpu.dot_dimension_numbers<[1], [0], [0], [1], [0, 0, 1, 1], [], []>} : vector<128x128xf32>, vector<128x128xf32>, vector<128x128xf32> -> vector<128x128xf32>
    %c0_3 = arith.constant 0 : index
    %c0_4 = arith.constant 0 : index
    %3 = vector.load %arg3[%c0_3, %c0_4] : memref<1x128xf32, #tpu.memory_space<vmem>>, vector<1x128xf32>
    %4 = vector.broadcast %3 : vector<1x128xf32> to vector<128x128xf32>
    %5 = arith.addf %2, %4 : vector<128x128xf32>
    %c0_5 = arith.constant 0 : index
    %c0_6 = arith.constant 0 : index
    %c0_7 = arith.constant 0 : index
    %6 = vector.load %arg4[%c0_5, %c0_6, %c0_7] : memref<2x128x128xf32, #tpu.memory_space<vmem>>, vector<1x128x128xf32>
    %7 = vector.shape_cast %6 : vector<1x128x128xf32> to vector<128x128xf32>
    %cst_8 = arith.constant dense<0.000000e+00> : vector<128x128xf32>
    %8 = tpu.matmul %5, %7, %cst_8 {dimension_numbers = #tpu.dot_dimension_numbers<[1], [0], [0], [1], [0, 0, 1, 1], [], []>} : vector<128x128xf32>, vector<128x128xf32>, vector<128x128xf32> -> vector<128x128xf32>
    %c0_9 = arith.constant 0 : index
    %c0_10 = arith.constant 0 : index
    %c0_11 = arith.constant 0 : index
    %9 = vector.load %arg5[%c0_9, %c0_10, %c0_11] : memref<2x1x128xf32, #tpu.memory_space<vmem>>, vector<1x1x128xf32>
    %10 = vector.shape_cast %9 : vector<1x1x128xf32> to vector<1x128xf32>
    %11 = vector.broadcast %10 : vector<1x128xf32> to vector<128x128xf32>
    %12 = arith.addf %8, %11 : vector<128x128xf32>
    %cst_12 = arith.constant 0.000000e+00 : f32
    %13 = vector.broadcast %cst_12 : f32 to vector<128x128xf32>
    %14 = arith.maximumf %12, %13 : vector<128x128xf32>
    %c1 = arith.constant 1 : index
    %c0_13 = arith.constant 0 : index
    %c0_14 = arith.constant 0 : index
    %15 = vector.load %arg4[%c1, %c0_13, %c0_14] : memref<2x128x128xf32, #tpu.memory_space<vmem>>, vector<1x128x128xf32>
    %16 = vector.shape_cast %15 : vector<1x128x128xf32> to vector<128x128xf32>
    %cst_15 = arith.constant dense<0.000000e+00> : vector<128x128xf32>
    %17 = tpu.matmul %14, %16, %cst_15 {dimension_numbers = #tpu.dot_dimension_numbers<[1], [0], [0], [1], [0, 0, 1, 1], [], []>} : vector<128x128xf32>, vector<128x128xf32>, vector<128x128xf32> -> vector<128x128xf32>
    %c1_16 = arith.constant 1 : index
    %c0_17 = arith.constant 0 : index
    %c0_18 = arith.constant 0 : index
    %18 = vector.load %arg5[%c1_16, %c0_17, %c0_18] : memref<2x1x128xf32, #tpu.memory_space<vmem>>, vector<1x1x128xf32>
    %19 = vector.shape_cast %18 : vector<1x1x128xf32> to vector<1x128xf32>
    %20 = vector.broadcast %19 : vector<1x128xf32> to vector<128x128xf32>
    %21 = arith.addf %17, %20 : vector<128x128xf32>
    %cst_19 = arith.constant 0.000000e+00 : f32
    %22 = vector.broadcast %cst_19 : f32 to vector<128x128xf32>
    %23 = arith.maximumf %21, %22 : vector<128x128xf32>
    %c0_20 = arith.constant 0 : index
    %c0_21 = arith.constant 0 : index
    %24 = vector.load %arg6[%c0_20, %c0_21] : memref<128x128xf32, #tpu.memory_space<vmem>>, vector<128x128xf32>
    %cst_22 = arith.constant dense<0.000000e+00> : vector<128x128xf32>
    %25 = tpu.matmul %23, %24, %cst_22 {dimension_numbers = #tpu.dot_dimension_numbers<[1], [0], [0], [1], [0, 0, 1, 1], [], []>} : vector<128x128xf32>, vector<128x128xf32>, vector<128x128xf32> -> vector<128x128xf32>
    %c0_23 = arith.constant 0 : index
    %c0_24 = arith.constant 0 : index
    %26 = vector.load %arg7[%c0_23, %c0_24] : memref<1x128xf32, #tpu.memory_space<vmem>>, vector<1x128xf32>
    %27 = vector.broadcast %26 : vector<1x128xf32> to vector<128x128xf32>
    %28 = arith.addf %25, %27 : vector<128x128xf32>
    %c0_25 = arith.constant 0 : index
    %c0_26 = arith.constant 0 : index
    %29 = vector.load %arg8[%c0_25, %c0_26] : memref<128x128xf32, #tpu.memory_space<vmem>>, vector<128x128xf32>
    tpu.vector_store %arg8[%c0_25, %c0_26], %28 {strides = array<i32>} : memref<128x128xf32, #tpu.memory_space<vmem>>, vector<128x128xf32>,
    return
  }
  func.func @transform_0(%arg0: i32) -> (i32, i32) {
    %c0_i32 = arith.constant 0 : i32
    %c0_i32_0 = arith.constant 0 : i32
    return %arg0, %c0_i32 : i32, i32
  }
  func.func @transform_1(%arg0: i32) -> (i32, i32) {
    %c0_i32 = arith.constant 0 : i32
    %c0_i32_0 = arith.constant 0 : i32
    %c0_i32_1 = arith.constant 0 : i32
    return %c0_i32, %c0_i32_0 : i32, i32
  }
  func.func @transform_2(%arg0: i32) -> (i32, i32) {
    %c0_i32 = arith.constant 0 : i32
    %c0_i32_0 = arith.constant 0 : i32
    %c0_i32_1 = arith.constant 0 : i32
    return %c0_i32, %c0_i32_0 : i32, i32
  }
  func.func @transform_3(%arg0: i32) -> (i32, i32, i32) {
    %c0_i32 = arith.constant 0 : i32
    %c0_i32_0 = arith.constant 0 : i32
    %c0_i32_1 = arith.constant 0 : i32
    %c0_i32_2 = arith.constant 0 : i32
    return %c0_i32, %c0_i32_0, %c0_i32_1 : i32, i32, i32
  }
  func.func @transform_4(%arg0: i32) -> (i32, i32, i32) {
    %c0_i32 = arith.constant 0 : i32
    %c0_i32_0 = arith.constant 0 : i32
    %c0_i32_1 = arith.constant 0 : i32
    %c0_i32_2 = arith.constant 0 : i32
    return %c0_i32, %c0_i32_0, %c0_i32_1 : i32, i32, i32
  }
  func.func @transform_5(%arg0: i32) -> (i32, i32) {
    %c0_i32 = arith.constant 0 : i32
    %c0_i32_0 = arith.constant 0 : i32
    %c0_i32_1 = arith.constant 0 : i32
    return %c0_i32, %c0_i32_0 : i32, i32
  }
  func.func @transform_6(%arg0: i32) -> (i32, i32) {
    %c0_i32 = arith.constant 0 : i32
    %c0_i32_0 = arith.constant 0 : i32
    %c0_i32_1 = arith.constant 0 : i32
    return %c0_i32, %c0_i32_0 : i32, i32
  }
  func.func @transform_7(%arg0: i32) -> (i32, i32) {
    %c0_i32 = arith.constant 0 : i32
    %c0_i32_0 = arith.constant 0 : i32
    return %arg0, %c0_i32 : i32, i32
  }
}

</mosaic_0001>

<bundles_post_ra>
// kernel: tpu_custom_call.1
= control target key start
LH: loop header
LB: loop body
LE: loop exit
PB: predicated region body
PF: predicated region fallthrough
CT: control target
= control target key end

     0   :  { %12 = vsyncpa [#allocation3], 0  ;;  %s2348_s0 = inlined_call_operand.hbm [shape: f32[256,128], index: 0, kind: input, shape index: {}]   ;;  %s2349_s1 = inlined_call_operand.hbm [shape: f32[128,128], index: 1, kind: input, shape index: {}]   ;;  %s2350_s2 = inlined_call_operand.vmem [shape: f32[1,128], index: 2, kind: input, shape index: {}]   ;;  %s2351_s3 = inlined_call_operand.hbm [shape: f32[2,128,128], index: 3, kind: input, shape index: {}]   ;;  %s2352_s4 = inlined_call_operand.vmem [shape: f32[2,1,128], index: 4, kind: input, shape index: {}]   ;;  %s2353_s5 = inlined_call_operand.hbm [shape: f32[128,128], index: 5, kind: input, shape index: {}]   ;;  %s2354_s6 = inlined_call_operand.vmem [shape: f32[1,128], index: 6, kind: input, shape index: {}]   ;;  %s2355_s7 = inlined_call_operand.hbm [shape: f32[256,128], index: 7, kind: output, shape index: {}]  }
   0x1   :  { %14 = vsyncpa [#allocation3 + $0x1], 0 }
   0x2   :  { %15 = vsyncpa [#allocation6], 0 }
   0x3   :  { %16 = vsyncpa [#allocation9], 0 }
   0x4   :  { %17 = vsyncpa [#allocation4], 0 }
   0x5   :  { %19 = vsyncpa [#allocation4 + $0x1], 0  ;;  %s2024_s24 = smov 0   ;;  %s2026_s25 = smov 0  }
   0x6   :  { %s2028_s26 = smov 0   ;;  %s2030_s27 = smov 0  }
   0x7 LB: > { %s2045_s28 = sadd.s32 4294967295, %s1973_s27   ;;  %s1197_s29 = sadd.s32 4294967294, %s1973_s27   ;;  %s1973_s27 = sphi %s2030_s27, %s2381_s27   ;;  %s1969_s26 = sphi %s2028_s26, %s2380_s26   ;;  %s1965_s25 = sphi %s2026_s25, %s2379_s25   ;;  %s1961_s24 = sphi %s2024_s24, %s2378_s24  }
   0x8   : > { %p45_p0 = scmp.ne.s32.totalorder %s1965_s25, %s1961_s24  ;;  %p2356_p1 = scmp.eq.s32.totalorder %s2045_s28, 0 }
   0x9   : > { %p201_p3 = scmp.eq.s32.totalorder %s1197_s29, 1  ;;  %p1198_p5 = scmp.ge.s32.totalorder %s1973_s27, 1 }
   0xa   : > { %p2054_p4 = por %p2356_p1, %p45_p0  ;;  %p208_p7 = scmp.lt.s32.totalorder %s1973_s27, 3 }
   0xb   : > { %p2059_p6 = por %p201_p3, %p45_p0  ;;  %s1975_s10 = smov [#allocation5]  }
   0xc   : > { %s2360_s30 = scalar_select %p2054_p4, 1, 0 }
   0xd   : > { %s2361_s8 = scalar_select %p2059_p6, 1, 0 }
   0xe   : > { %p2064_p8 = pnand %p1198_p5, %p208_p7  ;;  %s220_s11 = sshll.u32 %s1975_s10, 4  ;;  %s2068_s11 = int_to_ptr.vmem [resolvable:$true] %s220_s11 }
   0xf   : > { %2362 = sst [smem:[#allocation15_spill]] %s2361_s8  ;;  %s1976_s13 = smov [#allocation7]  }
  0x10   : > { %s2363_s9 = scalar_select %p2064_p8, 1, 0 }
  0x11   : > { %p1720_p9 = pneg %p2064_p8  ;;  %s236_s14 = sshll.u32 %s1976_s13, 4  ;;  %s2079_s14 = int_to_ptr.vmem [resolvable:$true] %s236_s14 }
  0x12   : > { %s1977_s15 = smov [#allocation8]   ;;  %s1785_s19 = scalar_lea.hbm %s2349_s1, 2048 }
  0x13   : > { %p2075_p11 = pnand %p1720_p9, %p2356_p1  ;;  %s2081_s16 = sshll.u32 %s1977_s15, 4  ;;  %s253_s16 = int_to_ptr.vmem [resolvable:$true] %s2081_s16 }
  0x14   : > { %p1786_p12 = scmp.ne.s32.totalorder %s2349_s1, %s1785_s19  ;;  %p1792_p5 = scmp.lt.u32.totalorder %s1785_s19, %s2349_s1 }
  0x15   : > { %p2091_p13 = pneg %p2075_p11 }
  0x17   : > { %p1788_p0 = pnand %p2091_p13, %p1786_p12 }
  0x19   : > { %p1789_p3 = pneg %p1788_p0 }
  0x1b   : > { %p1794_p7 = pnand %p1792_p5, %p1789_p3 }
  0x1d   : > { %1797 = shalt.err (!%p1794_p7)
}
  0x1e   : > { %s1798_s10 = scalar_lea.vmem %s2068_s11, 2048  ;;  %p1806_p2 = scmp.lt.s32.totalorder %s2068_s11, %s2068_s11 }
  0x1f   : > { %p1799_p9 = scmp.ne.s32.totalorder %s2068_s11, %s1798_s10  ;;  %p1807_p6 = scmp.lt.s32.totalorder %s1798_s10, %s1798_s10 }
  0x21   : > { %p1801_p10 = pnand %p1799_p9, %p2091_p13  ;;  %p1808_p12 = por %p1807_p6, %p1806_p2 }
  0x23   : > { %p1802_p1 = pneg %p1801_p10 }
  0x25   : > { %p1809_p0 = pnand %p1808_p12, %p1802_p1 }
  0x27   : > { %1812 = shalt.err (!%p1809_p0)
}
  0x28   : > { %s1978_s13 = smov 128   ;;  %s1979_s15 = smov 8  }
  0x29   : > { %1723 = dma.hbm_to_vmem [thread:$0]  (!%p2075_p11), %s2349_s1, 2048, %s2068_s11, [#allocation6], %s1978_s13, %s1978_s13, %s1979_s15  }
  0x2a   : > { %s1813_s21 = scalar_lea.hbm %s2351_s3, 4096 }
  0x2b   : > { %p1814_p1 = scmp.ne.s32.totalorder %s2351_s3, %s1813_s21  ;;  %p1820_p10 = scmp.lt.u32.totalorder %s1813_s21, %s2351_s3 }
  0x2d   : > { %p1816_p2 = pnand %p1814_p1, %p2091_p13 }
  0x2f   : > { %p1817_p6 = pneg %p1816_p2 }
  0x31   : > { %p1822_p3 = pnand %p1820_p10, %p1817_p6 }
  0x33   : > { %1825 = shalt.err (!%p1822_p3)
}
  0x34   : > { %s1826_s11 = scalar_lea.vmem %s2079_s14, 4096  ;;  %p1834_p12 = scmp.lt.s32.totalorder %s2079_s14, %s2079_s14 }
  0x35   : > { %p1827_p5 = scmp.ne.s32.totalorder %s2079_s14, %s1826_s11  ;;  %p1835_p0 = scmp.lt.s32.totalorder %s1826_s11, %s1826_s11 }
  0x37   : > { %p1829_p7 = pnand %p1827_p5, %p2091_p13  ;;  %p1836_p1 = por %p1835_p0, %p1834_p12 }
  0x39   : > { %p1830_p9 = pneg %p1829_p7 }
  0x3b   : > { %p1837_p2 = pnand %p1836_p1, %p1830_p9 }
  0x3d   : > { %1840 = shalt.err (!%p1837_p2)
}
  0x3e   : > { %1726 = dma.hbm_to_vmem [thread:$0]  (!%p2075_p11), %s2351_s3, 4096, %s2079_s14, [#allocation6], %s1978_s13, %s1978_s13, %s1979_s15  }
  0x3f   : > { %s1841_s20 = scalar_lea.hbm %s2353_s5, 2048 }
  0x40   : > { %p1842_p6 = scmp.ne.s32.totalorder %s2353_s5, %s1841_s20  ;;  %p1848_p5 = scmp.lt.u32.totalorder %s1841_s20, %s2353_s5 }
  0x42   : > { %p1844_p10 = pnand %p1842_p6, %p2091_p13 }
  0x44   : > { %p1845_p3 = pneg %p1844_p10 }
  0x46   : > { %p1850_p7 = pnand %p1848_p5, %p1845_p3 }
  0x48   : > { %1853 = shalt.err (!%p1850_p7)
}
  0x49   : > { %s1854_s11 = scalar_lea.vmem %s253_s16, 2048  ;;  %p1862_p1 = scmp.lt.s32.totalorder %s253_s16, %s253_s16 }
  0x4a   : > { %p1855_p9 = scmp.ne.s32.totalorder %s253_s16, %s1854_s11  ;;  %p1863_p2 = scmp.lt.s32.totalorder %s1854_s11, %s1854_s11 }
  0x4c   : > { %p1857_p12 = pnand %p1855_p9, %p2091_p13  ;;  %p1864_p4 = por %p1863_p2, %p1862_p1 }
  0x4e   : > { %p1858_p0 = pneg %p1857_p12 }
  0x50   : > { %p1865_p8 = pnand %p1864_p4, %p1858_p0 }
  0x52   : > { %1868 = shalt.err (!%p1865_p8)
}
  0x53   : > { %1729 = dma.hbm_to_vmem [thread:$0]  (!%p2075_p11), %s2353_s5, 2048, %s253_s16, [#allocation9], %s1978_s13, %s1978_s13, %s1979_s15  }
  0x54   : > { %s2164_s22 = sadd.s32 1, %s1973_s27   ;;  %s32_s17 = sadd.s32 1, %s1969_s26 }
  0x55   : > { %s29_s12 = ssub.s32 %s1973_s27, %s2164_s22  ;;  %p39_p8 = scmp.ne.s32.totalorder %s1969_s26, %s1965_s25 }
  0x56   : > { %p30_p4 = scmp.eq.s32.totalorder %s29_s12, 0  ;;  %p40_p13 = scmp.eq.s32.totalorder %s1973_s27, 0 }
  0x57   : > { %p1741_p6 = scmp.lt.s32.totalorder %s1973_s27, 2  ;;  %p2366_p3 = scmp.eq.s32.totalorder %s2045_s28, 1 }
  0x58   : > { %s2174_s18 = scalar_select %p30_p4, %s1969_s26, %s32_s17  }
  0x59   : > { %p41_p10 = por %p40_p13, %p39_p8  ;;  %p2178_p5 = por %p2366_p3, %p39_p8 }
  0x5a   : > { %s269_s20 = sand.u32 1, %s1969_s26   ;;  %s1222_s21 = sshll.u32 %s1973_s27, 11 }
  0x5b   : > { %s1203_s16 = sshll.u32 %s269_s20, 7  ;;  %s2187_s10 = scalar_lea.hbm %s2348_s0, %s1222_s21 }
  0x5c   : > { %s273_s11 = scalar_lea.vmem [#allocation2], %s1203_s16  ;;  %p2189_p11 = pnand %p1741_p6, %p41_p10 }
  0x5d   : > { %s280_s14 = sshll.u32 %s273_s11, 4  ;;  %s2195_s12 = scalar_lea.sflag [#allocation3], %s269_s20  ;;  %s2193_s14 = int_to_ptr.vmem [resolvable:$true] %s280_s14 }
  0x5e   : > { %s1869_s17 = scalar_lea.hbm %s2187_s10, 2048  ;;  %p1871_p9 = pneg %p2189_p11 }
  0x5f   : > { %p1870_p7 = scmp.ne.s32.totalorder %s2187_s10, %s1869_s17  ;;  %s1874_s23 = scalar_lea.hbm %s2348_s0, 4096 }
  0x60   : > { %p1875_p1 = scmp.lt.u32.totalorder %s2187_s10, %s2348_s0  ;;  %p1876_p2 = scmp.lt.u32.totalorder %s1874_s23, %s1869_s17 }
  0x61   : > { %p1872_p12 = pnand %p1871_p9, %p1870_p7  ;;  %p1878_p8 = scmp.lt.u32.totalorder %s1869_s17, %s2187_s10 }
  0x62   : > { %p1877_p4 = por %p1876_p2, %p1875_p1 }
  0x63   : > { %p1873_p0 = pneg %p1872_p12 }
  0x64   : > { %p1879_p13 = por %p1878_p8, %p1877_p4 }
  0x66   : > { %p1880_p6 = pnand %p1879_p13, %p1873_p0 }
  0x68   : > { %1883 = shalt.err (!%p1880_p6)
}
  0x69   : > { %s1884_s20 = scalar_lea.vmem %s2193_s14, 2048  ;;  %s1980_s21 = smov [#allocation2]  }
  0x6a   : > { %p1885_p10 = scmp.ne.s32.totalorder %s2193_s14, %s1884_s20  ;;  %s1889_s16 = sshll.u32 %s1980_s21, 4  ;;  %s1890_s16 = int_to_ptr.vmem [resolvable:$false] %s1889_s16 }
  0x6b   : > { %s1891_s29 = scalar_lea.vmem %s1890_s16, 4096  ;;  %p1892_p12 = scmp.lt.s32.totalorder %s2193_s14, %s1890_s16 }
  0x6c   : > { %p1887_p3 = pnand %p1885_p10, %p1871_p9  ;;  %p1893_p1 = scmp.lt.s32.totalorder %s1891_s29, %s1884_s20 }
  0x6e   : > { %p1888_p7 = pneg %p1887_p3  ;;  %p1894_p2 = por %p1893_p1, %p1892_p12 }
  0x70   : > { %p1895_p4 = pnand %p1894_p2, %p1888_p7 }
  0x72   : > { %1898 = shalt.err (!%p1895_p4)
}
  0x73   : > { %1733 = dma.hbm_to_vmem [thread:$0]  (!%p2189_p11), %s2187_s10, 2048, %s2193_s14, %s2195_s12, %s1978_s13, %s1978_s13, %s1979_s15  }
  0x74   : > { %p2369_p9 = scmp.ne.s32.totalorder %s2363_s9, 0 }
  0x75   : > { %s2229_s17 = sand.u32 (!%p2369_p9), 1, %s1965_s25   ;;  %p2370_p0 = scmp.ne.s32.totalorder (!%p2369_p9), %s2360_s30, 0 }
  0x76   : > { %292 = sbr.rel (%p2369_p9) target bundleno = 1078 (0x436), region = 48  ;;  %s1207_s23 = sshll.u32 (!%p2369_p9), %s2229_s17, 7 }
  0x77   : > { %s295_s11 = scalar_lea.sflag (!%p2369_p9), [#allocation3], %s2229_s17  ;;  %s2235_s8 = scalar_lea.vmem (!%p2369_p9), [#allocation2], %s1207_s23 }
  0x7d   : > { %1944 = dma.done.wait (%p2370_p0), %s295_s11, 2048  }
  0x7e   : > { %1946 = vsyncadd (%p2370_p0), %s295_s11, 4294965248  ;;  %p2371_p11 = scmp.eq.s32.totalorder %s2045_s28, 0 }
  0x80   : > { %1948 = dma.done.wait (%p2371_p11), [#allocation6], 6144   ;;  %p2372_p8 = pmov %p2371_p11 }
  0x82   : > { %1950 = vsyncadd (%p2372_p8), [#allocation6], 4294961152  ;;  %p2373_p13 = pmov %p2372_p8 }
  0x83   : > { %p2374_p6 = pmov %p2372_p8 }
  0x84   : > { %1952 = dma.done.wait (%p2373_p13), [#allocation9], 2048  }
  0x85   : > { %1954 = vsyncadd (%p2374_p6), [#allocation9], 4294965248  ;;  %v359_v0 = vld [vmem:[#allocation5] sm:$0xff]  ;;  %v360_v1 = vld [vmem:[#allocation5 + $0x8] sm:$0xff]  ;;  %s2279_s21 = scalar_lea.vmem [#allocation10], %s1207_s23  ;;  %s1223_s16 = sshll.u32 %s2045_s28, 11 }
  0x86   : > { %v361_v2 = vld [vmem:[#allocation5 + $0x10] sm:$0xff]  ;;  %v1576_v3 = vpack.c.bf16 %v360_v1, %v359_v0  ;;  %v362_v4 = vld [vmem:[#allocation5 + $0x18] sm:$0xff]  ;;  %v363_v6 = vld [vmem:[#allocation5 + $0x20] sm:$0xff]  ;;  %s1095_s29 = sshll.u32 %s2279_s21, 4  ;;  %s1082_s28 = scalar_lea.sflag [#allocation4], %s2229_s17  ;;  %s2302_s29 = int_to_ptr.vmem [resolvable:$true] %s1095_s29 }
  0x87   : > { %v1580_v5 = vpack.c.bf16 %v362_v4, %v361_v2  ;;  %v364_v7 = vld [vmem:[#allocation5 + $0x28] sm:$0xff]  ;;  %v343_v9 = vld [vmem:[%s2235_s8] sm:$0xff]  ;;  %v365_v10 = vld [vmem:[#allocation5 + $0x30] sm:$0xff]  ;;  %s1899_s30 = scalar_lea.vmem %s2302_s29, 2048  ;;  %s1981_s9 = smov [#allocation10]  }
  0x88   : > { %1577 = vmatprep.subr.bf16.mxu0 %v1576_v3  ;;  %v1584_v8 = vpack.c.bf16 %v364_v7, %v363_v6  ;;  %v366_v11 = vld [vmem:[#allocation5 + $0x38] sm:$0xff]  ;;  %1384 = vmatprep.mubr.f32.mxu0 %v343_v9  ;;  %v367_v13 = vld [vmem:[#allocation5 + $0x40] sm:$0xff]  ;;  %v368_v14 = vld [vmem:[#allocation5 + $0x48] sm:$0xff]  ;;  %p1900_p10 = scmp.ne.s32.totalorder %s2302_s29, %s1899_s30  ;;  %s1903_s13 = sshll.u32 %s1981_s9, 4  ;;  %s1904_s13 = int_to_ptr.vmem [resolvable:$false] %s1903_s13 }
  0x89   : > { %1579 = vmatpush3.bf16.msra.mxu0 %v1576_v3  ;;  %v1588_v12 = vpack.c.bf16 %v366_v11, %v365_v10  ;;  %v527_v15 = vld [vmem:[#allocation7] sm:$0xff]  ;;  %v528_v16 = vld [vmem:[#allocation7 + $0x8] sm:$0xff]  ;;  %v529_v17 = vld [vmem:[#allocation7 + $0x10] sm:$0xff]  ;;  %v1592_v21 = vpack.c.bf16 %v368_v14, %v367_v13  ;;  %s1905_s15 = scalar_lea.vmem %s1904_s13, 4096  ;;  %p1906_p12 = scmp.lt.s32.totalorder %s2302_s29, %s1904_s13 }
  0x8a   : > { %1581 = vmatprep.subr.bf16.mxu0 %v1580_v5  ;;  %v530_v18 = vld [vmem:[#allocation7 + $0x18] sm:$0xff]  ;;  %v1608_v19 = vpack.c.bf16 %v528_v16, %v527_v15  ;;  %v531_v22 = vld [vmem:[#allocation7 + $0x20] sm:$0xff]  ;;  %v532_v23 = vld [vmem:[#allocation7 + $0x28] sm:$0xff]  ;;  %p1901_p3 = pnand %p1900_p10, %p2178_p5  ;;  %p1907_p1 = scmp.lt.s32.totalorder %s1905_s15, %s1899_s30 }
  0x8b   : > { %v1612_v20 = vpack.c.bf16 %v530_v18, %v529_v17  ;;  %v369_v24 = vld [vmem:[#allocation5 + $0x50] sm:$0xff]  ;;  %v370_v25 = vld [vmem:[#allocation5 + $0x58] sm:$0xff]  ;;  %v1616_v26 = vpack.c.bf16 %v532_v23, %v531_v22  ;;  %v371_v30 = vld [vmem:[#allocation5 + $0x60] sm:$0xff] }
  0x8c   : > { %1609 = vmatprep.subr.bf16.mxu1 %v1608_v19  ;;  %v1596_v27 = vpack.c.bf16 %v370_v25, %v369_v24  ;;  %v533_v28 = vld [vmem:[#allocation7 + $0x30] sm:$0xff]  ;;  %v534_v29 = vld [vmem:[#allocation7 + $0x38] sm:$0xff]  ;;  %v372_v31 = vld [vmem:[#allocation5 + $0x68] sm:$0xff]  ;;  %p1902_p7 = pneg %p1901_p3  ;;  %p1908_p2 = por %p1907_p1, %p1906_p12 }
  0x8d   : > { %1583 = vmatpush3.bf16.msra.mxu0 %v1580_v5  ;;  %1611 = vmatpush3.bf16.msra.mxu1 %v1608_v19  ;;  %v1620_v32 = vpack.c.bf16 %v534_v29, %v533_v28  ;;  %v1600_v33 = vpack.c.bf16 %v372_v31, %v371_v30  ;;  %v535_v34 = vld [vmem:[#allocation7 + $0x40] sm:$0xff]  ;;  %v536_v35 = vld [vmem:[#allocation7 + $0x48] sm:$0xff]  ;;  %v373_v36 = vld [vmem:[#allocation5 + $0x70] sm:$0xff] }
  0x8e   : > { %1585 = vmatprep.subr.bf16.mxu0 %v1584_v8  ;;  %1613 = vmatprep.subr.bf16.mxu1 %v1612_v20  ;;  %v374_v37 = vld [vmem:[#allocation5 + $0x78] sm:$0xff]  ;;  %v1624_v38 = vpack.c.bf16 %v536_v35, %v535_v34  ;;  %v537_v40 = vld [vmem:[#allocation7 + $0x50] sm:$0xff]  ;;  %v539_v43 = vld [vmem:[#allocation7 + $0x60] sm:$0xff]  ;;  %p1909_p4 = pnand %p1908_p2, %p1902_p7 }
  0x8f   : > { %v1604_v39 = vpack.c.bf16 %v374_v37, %v373_v36  ;;  %v538_v41 = vld [vmem:[#allocation7 + $0x58] sm:$0xff]  ;;  %v540_v44 = vld [vmem:[#allocation7 + $0x68] sm:$0xff]  ;;  %v345_v47 = vld [vmem:[%s2235_s8 + $0x10] sm:$0xff] }
  0x90   : > { %v1628_v42 = vpack.c.bf16 %v538_v41, %v537_v40  ;;  %v344_v45 = vld [vmem:[%s2235_s8 + $0x8] sm:$0xff]  ;;  %v1632_v46 = vpack.c.bf16 %v540_v44, %v539_v43  ;;  %v346_v48 = vld [vmem:[%s2235_s8 + $0x18] sm:$0xff]  ;;  %v347_v49 = vld [vmem:[%s2235_s8 + $0x20] sm:$0xff] }
  0x91   : > { %1587 = vmatpush3.bf16.msra.mxu0 %v1584_v8  ;;  %1615 = vmatpush3.bf16.msra.mxu1 %v1612_v20  ;;  %v348_v50 = vld [vmem:[%s2235_s8 + $0x28] sm:$0xff]  ;;  %v349_v51 = vld [vmem:[%s2235_s8 + $0x30] sm:$0xff]  ;;  %v350_v52 = vld [vmem:[%s2235_s8 + $0x38] sm:$0xff] }
  0x92   : > { %1589 = vmatprep.subr.bf16.mxu0 %v1588_v12  ;;  %1617 = vmatprep.subr.bf16.mxu1 %v1616_v26  ;;  %v351_v53 = vld [vmem:[%s2235_s8 + $0x40] sm:$0xff]  ;;  %v352_v54 = vld [vmem:[%s2235_s8 + $0x48] sm:$0xff]  ;;  %v353_v55 = vld [vmem:[%s2235_s8 + $0x50] sm:$0xff] }
  0x93   : > { %v354_v56 = vld [vmem:[%s2235_s8 + $0x58] sm:$0xff]  ;;  %v355_v57 = vld [vmem:[%s2235_s8 + $0x60] sm:$0xff]  ;;  %v356_v58 = vld [vmem:[%s2235_s8 + $0x68] sm:$0xff] }
  0x94   : > { %v357_v59 = vld [vmem:[%s2235_s8 + $0x70] sm:$0xff]  ;;  %v358_v60 = vld [vmem:[%s2235_s8 + $0x78] sm:$0xff]  ;;  %v712_v0 = vld [vmem:[#allocation7 + $0x80] sm:$0xff]  ;;  %s2300_s8 = scalar_lea.hbm %s2355_s7, %s1223_s16 }
  0x95   : > { %1591 = vmatpush3.bf16.msra.mxu0 %v1588_v12  ;;  %1619 = vmatpush3.bf16.msra.mxu1 %v1616_v26  ;;  %v541_v61 = vld [vmem:[#allocation7 + $0x70] sm:$0xff]  ;;  %v542_v62 = vld [vmem:[#allocation7 + $0x78] sm:$0xff]  ;;  %v713_v1 = vld [vmem:[#allocation7 + $0x88] sm:$0xff] }
  0x96   : > { %1593 = vmatprep.subr.bf16.mxu0 %v1592_v21  ;;  %1621 = vmatprep.subr.bf16.mxu1 %v1620_v32  ;;  %v1636_v63 = vpack.c.bf16 %v542_v62, %v541_v61  ;;  %v714_v2 = vld [vmem:[#allocation7 + $0x90] sm:$0xff]  ;;  %v1640_v3 = vpack.c.bf16 %v713_v1, %v712_v0  ;;  %v715_v4 = vld [vmem:[#allocation7 + $0x98] sm:$0xff]  ;;  %v716_v6 = vld [vmem:[#allocation7 + $0xa0] sm:$0xff] }
  0x97   : > { %v1644_v5 = vpack.c.bf16 %v715_v4, %v714_v2  ;;  %v717_v7 = vld [vmem:[#allocation7 + $0xa8] sm:$0xff]  ;;  %v718_v9 = vld [vmem:[#allocation7 + $0xb0] sm:$0xff]  ;;  %v719_v10 = vld [vmem:[#allocation7 + $0xb8] sm:$0xff] }
  0x98   : > { %v1648_v8 = vpack.c.bf16 %v717_v7, %v716_v6  ;;  %v1652_v11 = vpack.c.bf16 %v719_v10, %v718_v9  ;;  %v720_v12 = vld [vmem:[#allocation7 + $0xc0] sm:$0xff]  ;;  %v721_v13 = vld [vmem:[#allocation7 + $0xc8] sm:$0xff]  ;;  %v722_v15 = vld [vmem:[#allocation7 + $0xd0] sm:$0xff] }
  0x99   : > { %1595 = vmatpush3.bf16.msra.mxu0 %v1592_v21  ;;  %1623 = vmatpush3.bf16.msra.mxu1 %v1620_v32  ;;  %v1656_v14 = vpack.c.bf16 %v721_v13, %v720_v12  ;;  %v723_v16 = vld [vmem:[#allocation7 + $0xd8] sm:$0xff]  ;;  %v724_v18 = vld [vmem:[#allocation7 + $0xe0] sm:$0xff]  ;;  %v725_v19 = vld [vmem:[#allocation7 + $0xe8] sm:$0xff] }
  0x9a   : > { %1597 = vmatprep.subr.bf16.mxu0 %v1596_v27  ;;  %1625 = vmatprep.subr.bf16.mxu1 %v1624_v38  ;;  %v1660_v17 = vpack.c.bf16 %v723_v16, %v722_v15  ;;  %v1664_v20 = vpack.c.bf16 %v725_v19, %v724_v18  ;;  %v1212_v21 = vld [vmem:[%s2350_s2] ss:$0 sm:$0xff]  ;;  %v900_v61 = vld [vmem:[#allocation8 + $0x18] sm:$0xff]  ;;  %v902_v0 = vld [vmem:[#allocation8 + $0x28] sm:$0xff] }
  0x9b   : > { %v903_v2 = vld [vmem:[#allocation8 + $0x30] sm:$0xff]  ;;  %v906_v6 = vld [vmem:[#allocation8 + $0x48] sm:$0xff]  ;;  %v908_v9 = vld [vmem:[#allocation8 + $0x58] sm:$0xff] }
  0x9c   : > { %v910_v12 = vld [vmem:[#allocation8 + $0x68] sm:$0xff] }
  0x9d   : > { %1599 = vmatpush3.bf16.msra.mxu0 %v1596_v27  ;;  %1627 = vmatpush3.bf16.msra.mxu1 %v1624_v38 }
  0x9e   : > { %1601 = vmatprep.subr.bf16.mxu0 %v1600_v33  ;;  %1629 = vmatprep.subr.bf16.mxu1 %v1628_v42 }
  0xa1   : > { %1603 = vmatpush3.bf16.msra.mxu0 %v1600_v33  ;;  %1631 = vmatpush3.bf16.msra.mxu1 %v1628_v42 }
  0xa2   : > { %1605 = vmatprep.subr.bf16.mxu0 %v1604_v39  ;;  %1633 = vmatprep.subr.bf16.mxu1 %v1632_v46 }
  0xa5   : > { %1607 = vmatpush3.bf16.msra.mxu0 %v1604_v39  ;;  %1635 = vmatpush3.bf16.msra.mxu1 %v1632_v46 }
  0xa6   : > { %1637 = vmatprep.subr.bf16.mxu1 %v1636_v63  ;;  %1641 = vmatprep.subr.bf16.mxu0 %v1640_v3 }
  0xa8   : > { %1385 = vmatmul.mubr.f32.vlgmr.msra.gmra.mrb[0].mxu0 %v344_v45 }
  0xa9   : > { %1387 = vmatprep.mubr.f32.mxu0 %v345_v47  ;;  %1639 = vmatpush3.bf16.msra.mxu1 %v1636_v63  ;;  %v901_v63 = vld [vmem:[#allocation8 + $0x20] sm:$0xff] }
  0xaa   : > { %1643 = vmatpush3.bf16.msra.mxu0 %v1640_v3  ;;  %v1680_v1 = vpack.c.bf16 %v902_v0, %v901_v63  ;;  %v904_v3 = vld [vmem:[#allocation8 + $0x38] sm:$0xff]  ;;  %v911_v63 = vld [vmem:[#allocation8 + $0x70] sm:$0xff] }
  0xab   : > { %1645 = vmatprep.subr.bf16.mxu0 %v1644_v5  ;;  %v1684_v4 = vpack.c.bf16 %v904_v3, %v903_v2  ;;  %v912_v0 = vld [vmem:[#allocation8 + $0x78] sm:$0xff]  ;;  %v1215_v2 = vld [vmem:[%s2352_s4 + $0x1] ss:$0 sm:$0xff] }
  0xac   : > { %1388 = vmatmul.mubr.f32.gmra.mrb[2].mxu0 %v346_v48 }
  0xad   : > { %1390 = vmatprep.mubr.f32.mxu0 %v347_v49 }
  0xae   : > { %1647 = vmatpush3.bf16.msra.mxu0 %v1644_v5  ;;  %v905_v5 = vld [vmem:[#allocation8 + $0x40] sm:$0xff] }
  0xaf   : > { %1649 = vmatprep.subr.bf16.mxu0 %v1648_v8  ;;  %v1688_v7 = vpack.c.bf16 %v906_v6, %v905_v5 }
  0xb0   : > { %1391 = vmatmul.mubr.f32.gmra.mrb[4].mxu0 %v348_v50 }
  0xb1   : > { %1393 = vmatprep.mubr.f32.mxu0 %v349_v51 }
  0xb2   : > { %1651 = vmatpush3.bf16.msra.mxu0 %v1648_v8  ;;  %v907_v8 = vld [vmem:[#allocation8 + $0x50] sm:$0xff] }
  0xb3   : > { %1653 = vmatprep.subr.bf16.mxu0 %v1652_v11  ;;  %v1692_v10 = vpack.c.bf16 %v908_v9, %v907_v8 }
  0xb4   : > { %1394 = vmatmul.mubr.f32.gmra.mrb[6].mxu0 %v350_v52 }
  0xb5   : > { %1396 = vmatprep.mubr.f32.mxu0 %v351_v53 }
  0xb6   : > { %1655 = vmatpush3.bf16.msra.mxu0 %v1652_v11  ;;  %v909_v11 = vld [vmem:[#allocation8 + $0x60] sm:$0xff] }
  0xb7   : > { %1657 = vmatprep.subr.bf16.mxu0 %v1656_v14  ;;  %v1696_v13 = vpack.c.bf16 %v910_v12, %v909_v11 }
  0xb8   : > { %1397 = vmatmul.mubr.f32.gmra.mrb[8].mxu0 %v352_v54  ;;  %v726_v54 = vld [vmem:[#allocation7 + $0xf0] sm:$0xff] }
  0xb9   : > { %1399 = vmatprep.mubr.f32.mxu0 %v353_v55  ;;  %v727_v55 = vld [vmem:[#allocation7 + $0xf8] sm:$0xff] }
  0xba   : > { %1659 = vmatpush3.bf16.msra.mxu0 %v1656_v14  ;;  %v1213_v14 = vld [vmem:[%s2352_s4] ss:$0 sm:$0xff] }
  0xbb   : > { %1661 = vmatprep.subr.bf16.mxu0 %v1660_v17 }
  0xbc   : > { %1400 = vmatmul.mubr.f32.gmra.mrb[10].mxu0 %v354_v56  ;;  %v1668_v56 = vpack.c.bf16 %v727_v55, %v726_v54 }
  0xbd   : > { %1402 = vmatprep.mubr.f32.mxu0 %v355_v57  ;;  %v897_v57 = vld [vmem:[#allocation8] sm:$0xff] }
  0xbe   : > { %1663 = vmatpush3.bf16.msra.mxu0 %v1660_v17 }
  0xbf   : > { %1665 = vmatprep.subr.bf16.mxu0 %v1664_v20 }
  0xc0   : > { %1403 = vmatmul.mubr.f32.gmra.mrb[12].mxu0 %v356_v58  ;;  %v898_v58 = vld [vmem:[#allocation8 + $0x8] sm:$0xff] }
  0xc1   : > { %1405 = vmatprep.mubr.f32.mxu0 %v357_v59  ;;  %v899_v59 = vld [vmem:[#allocation8 + $0x10] sm:$0xff] }
  0xc2   : > { %1667 = vmatpush3.bf16.msra.mxu0 %v1664_v20  ;;  %v1676_v62 = vpack.c.bf16 %v900_v61, %v899_v59 }
  0xc3   : > { %1669 = vmatprep.subr.bf16.mxu0 %v1668_v56 }
  0xc4   : > { %1406 = vmatmul.mubr.f32.gmra.mrb[14].mxu0 %v358_v60  ;;  %v1672_v60 = vpack.c.bf16 %v898_v58, %v897_v57 }
  0xc6   : > { %1671 = vmatpush3.bf16.msra.mxu0 %v1668_v56  ;;  %1673 = vmatprep.subr.bf16.mxu1 %v1672_v60 }
 0x17b   : > { %v1386_v22 = vpop.f32.mrb[0].mxu0 }
 0x17c   : > { %v448_v23 = vpop.f32.mrb[1].mxu0  ;;  %v454_v25 = vadd.f32 %v1386_v22, %v1212_v21 }
 0x17d   : > { %v449_v24 = vadd.f32 %v1212_v21, %v448_v23 }
 0x17f   : > { %v1389_v26 = vpop.f32.mrb[2].mxu0  ;;  %1440 = vmatprep.mubr.f32.mxu1 %v449_v24 }
 0x180   : > { %v458_v27 = vpop.f32.mrb[3].mxu0  ;;  %1441 = vmatmul.mubr.f32.vlgmr.msra.gmra.mrb[0].mxu1 %v454_v25  ;;  %v464_v29 = vadd.f32 %v1389_v26, %v1212_v21 }
 0x181   : > { %v459_v28 = vadd.f32 %v1212_v21, %v458_v27  ;;  %1675 = vmatpush3.bf16.msra.mxu1 %v1672_v60 }
 0x182   : > { %1677 = vmatprep.subr.bf16.mxu1 %v1676_v62 }
 0x183   : > { %v1392_v30 = vpop.f32.mrb[4].mxu0  ;;  %1443 = vmatprep.mubr.f32.mxu1 %v459_v28 }
 0x184   : > { %v468_v31 = vpop.f32.mrb[5].mxu0  ;;  %1444 = vmatmul.mubr.f32.gmra.mrb[2].mxu1 %v464_v29  ;;  %v474_v33 = vadd.f32 %v1392_v30, %v1212_v21 }
 0x185   : > { %v469_v32 = vadd.f32 %v1212_v21, %v468_v31  ;;  %1679 = vmatpush3.bf16.msra.mxu1 %v1676_v62 }
 0x186   : > { %1681 = vmatprep.subr.bf16.mxu1 %v1680_v1 }
 0x187   : > { %v1395_v34 = vpop.f32.mrb[6].mxu0  ;;  %1446 = vmatprep.mubr.f32.mxu1 %v469_v32 }
 0x188   : > { %v478_v35 = vpop.f32.mrb[7].mxu0  ;;  %1447 = vmatmul.mubr.f32.gmra.mrb[4].mxu1 %v474_v33  ;;  %v484_v37 = vadd.f32 %v1395_v34, %v1212_v21 }
 0x189   : > { %v479_v36 = vadd.f32 %v1212_v21, %v478_v35  ;;  %1683 = vmatpush3.bf16.msra.mxu1 %v1680_v1  ;;  %v1700_v1 = vpack.c.bf16 %v912_v0, %v911_v63 }
 0x18a   : > { %1685 = vmatprep.subr.bf16.mxu1 %v1684_v4 }
 0x18b   : > { %v1398_v38 = vpop.f32.mrb[8].mxu0  ;;  %1449 = vmatprep.mubr.f32.mxu1 %v479_v36 }
 0x18c   : > { %v488_v39 = vpop.f32.mrb[9].mxu0  ;;  %1450 = vmatmul.mubr.f32.gmra.mrb[6].mxu1 %v484_v37  ;;  %v494_v41 = vadd.f32 %v1398_v38, %v1212_v21 }
 0x18d   : > { %v489_v40 = vadd.f32 %v1212_v21, %v488_v39  ;;  %1687 = vmatpush3.bf16.msra.mxu1 %v1684_v4 }
 0x18e   : > { %1689 = vmatprep.subr.bf16.mxu1 %v1688_v7 }
 0x18f   : > { %v1401_v42 = vpop.f32.mrb[10].mxu0  ;;  %1452 = vmatprep.mubr.f32.mxu1 %v489_v40 }
 0x190   : > { %v498_v43 = vpop.f32.mrb[11].mxu0  ;;  %1453 = vmatmul.mubr.f32.gmra.mrb[8].mxu1 %v494_v41  ;;  %v504_v45 = vadd.f32 %v1401_v42, %v1212_v21 }
 0x191   : > { %v499_v44 = vadd.f32 %v1212_v21, %v498_v43  ;;  %1691 = vmatpush3.bf16.msra.mxu1 %v1688_v7 }
 0x192   : > { %1693 = vmatprep.subr.bf16.mxu1 %v1692_v10 }
 0x193   : > { %v1404_v46 = vpop.f32.mrb[12].mxu0  ;;  %1455 = vmatprep.mubr.f32.mxu1 %v499_v44 }
 0x194   : > { %v508_v47 = vpop.f32.mrb[13].mxu0  ;;  %1456 = vmatmul.mubr.f32.gmra.mrb[10].mxu1 %v504_v45  ;;  %v514_v49 = vadd.f32 %v1404_v46, %v1212_v21 }
 0x195   : > { %v509_v48 = vadd.f32 %v1212_v21, %v508_v47  ;;  %1695 = vmatpush3.bf16.msra.mxu1 %v1692_v10 }
 0x196   : > { %1697 = vmatprep.subr.bf16.mxu1 %v1696_v13 }
 0x197   : > { %v1407_v50 = vpop.f32.mrb[14].mxu0  ;;  %1458 = vmatprep.mubr.f32.mxu1 %v509_v48 }
 0x198   : > { %v518_v51 = vpop.f32.mrb[15].mxu0  ;;  %1459 = vmatmul.mubr.f32.gmra.mrb[12].mxu1 %v514_v49  ;;  %v524_v53 = vadd.f32 %v1407_v50, %v1212_v21 }
 0x199   : > { %v519_v52 = vadd.f32 %v1212_v21, %v518_v51  ;;  %1699 = vmatpush3.bf16.msra.mxu1 %v1696_v13 }
 0x19a   : > { %1701 = vmatprep.subr.bf16.mxu1 %v1700_v1 }
 0x19b   : > { %1461 = vmatprep.mubr.f32.mxu1 %v519_v52 }
 0x19c   : > { %1462 = vmatmul.mubr.f32.gmra.mrb[14].mxu1 %v524_v53 }
 0x19d   : > { %1703 = vmatpush3.bf16.msra.mxu1 %v1700_v1 }
 0x253   : > { %v1442_v15 = vpop.f32.mrb[0].mxu1 }
 0x254   : > { %v622_v16 = vadd.f32 %v1442_v15, %v1213_v14  ;;  %v616_v17 = vpop.f32.mrb[1].mxu1 }
 0x255   : > { %v617_v18 = vadd.f32 %v1213_v14, %v616_v17 }
 0x256   : > { %v696_v21 = vmax.f32 %v622_v16, 0.0 }
 0x257   : > { %v695_v19 = vmax.f32 %v617_v18, 0.0  ;;  %v1445_v20 = vpop.f32.mrb[2].mxu1 }
 0x258   : > { %v632_v22 = vadd.f32 %v1445_v20, %v1213_v14  ;;  %v626_v23 = vpop.f32.mrb[3].mxu1 }
 0x259   : > { %v627_v24 = vadd.f32 %v1213_v14, %v626_v23  ;;  %1496 = vmatprep.mubr.f32.mxu0 %v695_v19 }
 0x25a   : > { %1497 = vmatmul.mubr.f32.vlgmr.msra.gmra.mrb[16].mxu0 %v696_v21  ;;  %v698_v27 = vmax.f32 %v632_v22, 0.0 }
 0x25b   : > { %v697_v25 = vmax.f32 %v627_v24, 0.0  ;;  %v1448_v26 = vpop.f32.mrb[4].mxu1 }
 0x25c   : > { %v642_v28 = vadd.f32 %v1448_v26, %v1213_v14  ;;  %v636_v29 = vpop.f32.mrb[5].mxu1 }
 0x25d   : > { %v637_v30 = vadd.f32 %v1213_v14, %v636_v29  ;;  %1499 = vmatprep.mubr.f32.mxu0 %v697_v25 }
 0x25e   : > { %1500 = vmatmul.mubr.f32.gmra.mrb[18].mxu0 %v698_v27  ;;  %v700_v33 = vmax.f32 %v642_v28, 0.0 }
 0x25f   : > { %v699_v31 = vmax.f32 %v637_v30, 0.0  ;;  %v1451_v32 = vpop.f32.mrb[6].mxu1 }
 0x260   : > { %v652_v34 = vadd.f32 %v1451_v32, %v1213_v14  ;;  %v646_v35 = vpop.f32.mrb[7].mxu1 }
 0x261   : > { %v647_v36 = vadd.f32 %v1213_v14, %v646_v35  ;;  %1502 = vmatprep.mubr.f32.mxu0 %v699_v31 }
 0x262   : > { %1503 = vmatmul.mubr.f32.gmra.mrb[20].mxu0 %v700_v33  ;;  %v702_v39 = vmax.f32 %v652_v34, 0.0 }
 0x263   : > { %v701_v37 = vmax.f32 %v647_v36, 0.0  ;;  %v1454_v38 = vpop.f32.mrb[8].mxu1 }
 0x264   : > { %v662_v40 = vadd.f32 %v1454_v38, %v1213_v14  ;;  %v656_v41 = vpop.f32.mrb[9].mxu1 }
 0x265   : > { %v657_v42 = vadd.f32 %v1213_v14, %v656_v41  ;;  %1505 = vmatprep.mubr.f32.mxu0 %v701_v37 }
 0x266   : > { %1506 = vmatmul.mubr.f32.gmra.mrb[22].mxu0 %v702_v39  ;;  %v704_v45 = vmax.f32 %v662_v40, 0.0 }
 0x267   : > { %v703_v43 = vmax.f32 %v657_v42, 0.0  ;;  %v1457_v44 = vpop.f32.mrb[10].mxu1 }
 0x268   : > { %v672_v46 = vadd.f32 %v1457_v44, %v1213_v14  ;;  %v666_v47 = vpop.f32.mrb[11].mxu1 }
 0x269   : > { %v667_v48 = vadd.f32 %v1213_v14, %v666_v47  ;;  %1508 = vmatprep.mubr.f32.mxu0 %v703_v43 }
 0x26a   : > { %1509 = vmatmul.mubr.f32.gmra.mrb[24].mxu0 %v704_v45  ;;  %v706_v51 = vmax.f32 %v672_v46, 0.0 }
 0x26b   : > { %v705_v49 = vmax.f32 %v667_v48, 0.0  ;;  %v1460_v50 = vpop.f32.mrb[12].mxu1 }
 0x26c   : > { %v682_v52 = vadd.f32 %v1460_v50, %v1213_v14  ;;  %v676_v53 = vpop.f32.mrb[13].mxu1 }
 0x26d   : > { %v677_v54 = vadd.f32 %v1213_v14, %v676_v53  ;;  %1511 = vmatprep.mubr.f32.mxu0 %v705_v49 }
 0x26e   : > { %1512 = vmatmul.mubr.f32.gmra.mrb[26].mxu0 %v706_v51  ;;  %v708_v57 = vmax.f32 %v682_v52, 0.0  ;;  %v1216_v51 = vld [vmem:[%s2354_s6] ss:$0 sm:$0xff] }
 0x26f   : > { %v707_v55 = vmax.f32 %v677_v54, 0.0  ;;  %v1463_v56 = vpop.f32.mrb[14].mxu1 }
 0x270   : > { %v692_v58 = vadd.f32 %v1463_v56, %v1213_v14  ;;  %v686_v59 = vpop.f32.mrb[15].mxu1 }
 0x271   : > { %v687_v60 = vadd.f32 %v1213_v14, %v686_v59  ;;  %1514 = vmatprep.mubr.f32.mxu0 %v707_v55 }
 0x272   : > { %1515 = vmatmul.mubr.f32.gmra.mrb[28].mxu0 %v708_v57  ;;  %v710_v62 = vmax.f32 %v692_v58, 0.0 }
 0x273   : > { %v709_v61 = vmax.f32 %v687_v60, 0.0 }
 0x275   : > { %1517 = vmatprep.mubr.f32.mxu0 %v709_v61 }
 0x276   : > { %1518 = vmatmul.mubr.f32.gmra.mrb[30].mxu0 %v710_v62 }
 0x32d   : > { %v1498_v3 = vpop.f32.mrb[16].mxu0 }
 0x32e   : > { %v808_v4 = vadd.f32 %v1498_v3, %v1215_v2  ;;  %v802_v5 = vpop.f32.mrb[17].mxu0 }
 0x32f   : > { %v803_v6 = vadd.f32 %v1215_v2, %v802_v5 }
 0x330   : > { %v882_v9 = vmax.f32 %v808_v4, 0.0 }
 0x331   : > { %v881_v7 = vmax.f32 %v803_v6, 0.0  ;;  %v1501_v8 = vpop.f32.mrb[18].mxu0 }
 0x332   : > { %v818_v10 = vadd.f32 %v1501_v8, %v1215_v2  ;;  %v812_v11 = vpop.f32.mrb[19].mxu0 }
 0x333   : > { %v813_v12 = vadd.f32 %v1215_v2, %v812_v11  ;;  %1552 = vmatprep.mubr.f32.mxu1 %v881_v7 }
 0x334   : > { %1553 = vmatmul.mubr.f32.vlgmr.msra.gmra.mrb[16].mxu1 %v882_v9  ;;  %v884_v15 = vmax.f32 %v818_v10, 0.0 }
 0x335   : > { %v883_v13 = vmax.f32 %v813_v12, 0.0  ;;  %v1504_v14 = vpop.f32.mrb[20].mxu0 }
 0x336   : > { %v828_v16 = vadd.f32 %v1504_v14, %v1215_v2  ;;  %v822_v17 = vpop.f32.mrb[21].mxu0 }
 0x337   : > { %v823_v18 = vadd.f32 %v1215_v2, %v822_v17  ;;  %1555 = vmatprep.mubr.f32.mxu1 %v883_v13 }
 0x338   : > { %1556 = vmatmul.mubr.f32.gmra.mrb[18].mxu1 %v884_v15  ;;  %v886_v21 = vmax.f32 %v828_v16, 0.0 }
 0x339   : > { %v885_v19 = vmax.f32 %v823_v18, 0.0  ;;  %v1507_v20 = vpop.f32.mrb[22].mxu0 }
 0x33a   : > { %v838_v22 = vadd.f32 %v1507_v20, %v1215_v2  ;;  %v832_v23 = vpop.f32.mrb[23].mxu0 }
 0x33b   : > { %v833_v24 = vadd.f32 %v1215_v2, %v832_v23  ;;  %1558 = vmatprep.mubr.f32.mxu1 %v885_v19 }
 0x33c   : > { %1559 = vmatmul.mubr.f32.gmra.mrb[20].mxu1 %v886_v21  ;;  %v888_v27 = vmax.f32 %v838_v22, 0.0 }
 0x33d   : > { %v887_v25 = vmax.f32 %v833_v24, 0.0  ;;  %v1510_v26 = vpop.f32.mrb[24].mxu0 }
 0x33e   : > { %v848_v28 = vadd.f32 %v1510_v26, %v1215_v2  ;;  %v842_v29 = vpop.f32.mrb[25].mxu0 }
 0x33f   : > { %v843_v30 = vadd.f32 %v1215_v2, %v842_v29  ;;  %1561 = vmatprep.mubr.f32.mxu1 %v887_v25 }
 0x340   : > { %1562 = vmatmul.mubr.f32.gmra.mrb[22].mxu1 %v888_v27  ;;  %v890_v33 = vmax.f32 %v848_v28, 0.0 }
 0x341   : > { %v889_v31 = vmax.f32 %v843_v30, 0.0  ;;  %v1513_v32 = vpop.f32.mrb[26].mxu0 }
 0x342   : > { %v858_v34 = vadd.f32 %v1513_v32, %v1215_v2  ;;  %v852_v35 = vpop.f32.mrb[27].mxu0 }
 0x343   : > { %v853_v36 = vadd.f32 %v1215_v2, %v852_v35  ;;  %1564 = vmatprep.mubr.f32.mxu1 %v889_v31 }
 0x344   : > { %1565 = vmatmul.mubr.f32.gmra.mrb[24].mxu1 %v890_v33  ;;  %v892_v39 = vmax.f32 %v858_v34, 0.0 }
 0x345   : > { %v891_v37 = vmax.f32 %v853_v36, 0.0  ;;  %v1516_v38 = vpop.f32.mrb[28].mxu0 }
 0x346   : > { %v868_v40 = vadd.f32 %v1516_v38, %v1215_v2  ;;  %v862_v41 = vpop.f32.mrb[29].mxu0 }
 0x347   : > { %v863_v42 = vadd.f32 %v1215_v2, %v862_v41  ;;  %1567 = vmatprep.mubr.f32.mxu1 %v891_v37 }
 0x348   : > { %1568 = vmatmul.mubr.f32.gmra.mrb[26].mxu1 %v892_v39  ;;  %v894_v45 = vmax.f32 %v868_v40, 0.0 }
 0x349   : > { %v893_v43 = vmax.f32 %v863_v42, 0.0  ;;  %v1519_v44 = vpop.f32.mrb[30].mxu0 }
 0x34a   : > { %v878_v46 = vadd.f32 %v1519_v44, %v1215_v2  ;;  %v872_v47 = vpop.f32.mrb[31].mxu0 }
 0x34b   : > { %v873_v48 = vadd.f32 %v1215_v2, %v872_v47  ;;  %1570 = vmatprep.mubr.f32.mxu1 %v893_v43 }
 0x34c   : > { %1571 = vmatmul.mubr.f32.gmra.mrb[28].mxu1 %v894_v45  ;;  %v896_v50 = vmax.f32 %v878_v46, 0.0 }
 0x34d   : > { %v895_v49 = vmax.f32 %v873_v48, 0.0 }
 0x34f   : > { %1573 = vmatprep.mubr.f32.mxu1 %v895_v49 }
 0x350   : > { %1574 = vmatmul.mubr.f32.gmra.mrb[30].mxu1 %v896_v50 }
 0x407   : > { %v1554_v52 = vpop.f32.mrb[16].mxu1 }
 0x408   : > { %v992_v53 = vadd.f32 %v1554_v52, %v1216_v51  ;;  %v986_v54 = vpop.f32.mrb[17].mxu1 }
 0x409   : > { %v987_v55 = vadd.f32 %v1216_v51, %v986_v54 }
 0x40a   : > { %1066 = vst [vmem:[%s2279_s21 + $0x8] sm:$0xff] %v992_v53 }
 0x40b   : > { %1065 = vst [vmem:[%s2279_s21] sm:$0xff] %v987_v55  ;;  %v1557_v56 = vpop.f32.mrb[18].mxu1 }
 0x40c   : > { %v1002_v57 = vadd.f32 %v1557_v56, %v1216_v51  ;;  %v996_v58 = vpop.f32.mrb[19].mxu1 }
 0x40d   : > { %v997_v59 = vadd.f32 %v1216_v51, %v996_v58 }
 0x40e   : > { %1068 = vst [vmem:[%s2279_s21 + $0x18] sm:$0xff] %v1002_v57 }
 0x40f   : > { %1067 = vst [vmem:[%s2279_s21 + $0x10] sm:$0xff] %v997_v59  ;;  %v1560_v60 = vpop.f32.mrb[20].mxu1 }
 0x410   : > { %v1012_v61 = vadd.f32 %v1560_v60, %v1216_v51  ;;  %v1006_v62 = vpop.f32.mrb[21].mxu1 }
 0x411   : > { %v1007_v63 = vadd.f32 %v1216_v51, %v1006_v62 }
 0x412   : > { %1070 = vst [vmem:[%s2279_s21 + $0x28] sm:$0xff] %v1012_v61 }
 0x413   : > { %1069 = vst [vmem:[%s2279_s21 + $0x20] sm:$0xff] %v1007_v63  ;;  %v1563_v0 = vpop.f32.mrb[22].mxu1 }
 0x414   : > { %v1022_v1 = vadd.f32 %v1563_v0, %v1216_v51  ;;  %v1016_v2 = vpop.f32.mrb[23].mxu1 }
 0x415   : > { %v1017_v3 = vadd.f32 %v1216_v51, %v1016_v2 }
 0x416   : > { %1072 = vst [vmem:[%s2279_s21 + $0x38] sm:$0xff] %v1022_v1 }
 0x417   : > { %1071 = vst [vmem:[%s2279_s21 + $0x30] sm:$0xff] %v1017_v3  ;;  %v1566_v4 = vpop.f32.mrb[24].mxu1 }
 0x418   : > { %v1032_v5 = vadd.f32 %v1566_v4, %v1216_v51  ;;  %v1026_v6 = vpop.f32.mrb[25].mxu1 }
 0x419   : > { %v1027_v7 = vadd.f32 %v1216_v51, %v1026_v6 }
 0x41a   : > { %1074 = vst [vmem:[%s2279_s21 + $0x48] sm:$0xff] %v1032_v5 }
 0x41b   : > { %1073 = vst [vmem:[%s2279_s21 + $0x40] sm:$0xff] %v1027_v7  ;;  %v1569_v8 = vpop.f32.mrb[26].mxu1 }
 0x41c   : > { %v1042_v9 = vadd.f32 %v1569_v8, %v1216_v51  ;;  %v1036_v10 = vpop.f32.mrb[27].mxu1 }
 0x41d   : > { %v1037_v11 = vadd.f32 %v1216_v51, %v1036_v10 }
 0x41e   : > { %1076 = vst [vmem:[%s2279_s21 + $0x58] sm:$0xff] %v1042_v9 }
 0x41f   : > { %1075 = vst [vmem:[%s2279_s21 + $0x50] sm:$0xff] %v1037_v11  ;;  %v1572_v12 = vpop.f32.mrb[28].mxu1 }
 0x420   : > { %v1052_v13 = vadd.f32 %v1572_v12, %v1216_v51  ;;  %v1046_v14 = vpop.f32.mrb[29].mxu1 }
 0x421   : > { %v1047_v15 = vadd.f32 %v1216_v51, %v1046_v14 }
 0x422   : > { %1078 = vst [vmem:[%s2279_s21 + $0x68] sm:$0xff] %v1052_v13 }
 0x423   : > { %1077 = vst [vmem:[%s2279_s21 + $0x60] sm:$0xff] %v1047_v15  ;;  %v1575_v16 = vpop.f32.mrb[30].mxu1 }
 0x424   : > { %v1062_v17 = vadd.f32 %v1575_v16, %v1216_v51  ;;  %v1056_v18 = vpop.f32.mrb[31].mxu1 }
 0x425   : > { %v1057_v19 = vadd.f32 %v1216_v51, %v1056_v18 }
 0x426   : > { %1080 = vst [vmem:[%s2279_s21 + $0x78] sm:$0xff] %v1062_v17 }
 0x427   : > { %1079 = vst [vmem:[%s2279_s21 + $0x70] sm:$0xff] %v1057_v19 }
 0x428   : > { %1912 = shalt.err (!%p1909_p4)
}
 0x429   : > { %s1913_s10 = scalar_lea.hbm %s2300_s8, 2048  ;;  %s1917_s20 = scalar_lea.hbm %s2355_s7, 4096 }
 0x42a   : > { %p1914_p9 = scmp.ne.s32.totalorder %s2300_s8, %s1913_s10  ;;  %p1918_p8 = scmp.lt.u32.totalorder %s2300_s8, %s2355_s7 }
 0x42b   : > { %p1919_p13 = scmp.lt.u32.totalorder %s1917_s20, %s1913_s10  ;;  %p1921_p10 = scmp.lt.u32.totalorder %s1913_s10, %s2300_s8 }
 0x42c   : > { %p1915_p0 = pnand %p1914_p9, %p2178_p5 }
 0x42d   : > { %p1920_p6 = por %p1919_p13, %p1918_p8 }
 0x42e   : > { %p1916_p11 = pneg %p1915_p0 }
 0x42f   : > { %p1922_p3 = por %p1921_p10, %p1920_p6 }
 0x431   : > { %p1923_p7 = pnand %p1922_p3, %p1916_p11 }
 0x433   : > { %1926 = shalt.err (!%p1923_p7)
}
 0x434   : > { %s1982_s23 = smov 128   ;;  %s1983_s11 = smov 8  }
 0x435   : > { %1718 = dma.vmem_to_hbm [thread:$0]  (%p2178_p5), %s2302_s29, 2048, %s2300_s8, %s1082_s28, %s1982_s23, %s1982_s23, %s1983_s11  }
 0x436 PF: > { %s2375_s30 = sld [smem:[#allocation15_spill]]  ;;  %s1110_s9 = sand.u32 1, %s1961_s24  }
 0x437   : > { %p2377_p1 = scmp.ge.s32.totalorder %s1973_s27, 2  ;;  %s1111_s13 = scalar_lea.sflag [#allocation4], %s1110_s9 }
 0x43c   : > { %p2376_p12 = scmp.ne.s32.totalorder %s2375_s30, 0 }
 0x43e   : > { %p1735_p2 = pnand %p2377_p1, %p2376_p12 }
 0x440   : > { %1956 = dma.done.wait (!%p1735_p2), %s1111_s13, 2048  }
 0x441   : > { %1958 = vsyncadd (!%p1735_p2), %s1111_s13, 4294965248  ;;  %p22_p4 = scmp.ge.s32.totalorder %s2164_s22, 4   ;;  %s2378_s24 = smov %s1965_s25 }
 0x442   : > { %s2379_s25 = smov %s1969_s26  ;;  %s2380_s26 = smov %s2174_s18 }
 0x443   : > { %s2381_s27 = smov %s2164_s22  ;;  %24 = sbr.rel (!%p22_p4) target bundleno = 7 (0x7), region = 107 }
 0x44a   :  { %1116 = vsyncpa [#allocation3], 1 }
 0x44b   :  { %1118 = vsyncpa [#allocation3 + $0x1], 1 }
 0x44c   :  { %1119 = vsyncpa [#allocation6], 1 }
 0x44d   :  { %1120 = vsyncpa [#allocation9], 1 }
 0x44e   :  { %1121 = vsyncpa [#allocation4], 1 }
 0x44f   :  { %1123 = vsyncpa [#allocation4 + $0x1], 1 }

// kernel: tpu_custom_call.1
= control target key start
LH: loop header
LB: loop body
LE: loop exit
PB: predicated region body
PF: predicated region fallthrough
CT: control target
= control target key end

     0   :  { %12 = vsyncpa [#allocation3], 0  ;;  %s2348_s0 = inlined_call_operand.hbm [shape: f32[256,128], index: 0, kind: input, shape index: {}]   ;;  %s2349_s1 = inlined_call_operand.hbm [shape: f32[128,128], index: 1, kind: input, shape index: {}]   ;;  %s2350_s2 = inlined_call_operand.vmem [shape: f32[1,128], index: 2, kind: input, shape index: {}]   ;;  %s2351_s3 = inlined_call_operand.hbm [shape: f32[2,128,128], index: 3, kind: input, shape index: {}]   ;;  %s2352_s4 = inlined_call_operand.vmem [shape: f32[2,1,128], index: 4, kind: input, shape index: {}]   ;;  %s2353_s5 = inlined_call_operand.hbm [shape: f32[128,128], index: 5, kind: input, shape index: {}]   ;;  %s2354_s6 = inlined_call_operand.vmem [shape: f32[1,128], index: 6, kind: input, shape index: {}]   ;;  %s2355_s7 = inlined_call_operand.hbm [shape: f32[256,128], index: 7, kind: output, shape index: {}]  }
   0x1   :  { %14 = vsyncpa [#allocation3 + $0x1], 0 }
   0x2   :  { %15 = vsyncpa [#allocation6], 0 }
   0x3   :  { %16 = vsyncpa [#allocation9], 0 }
   0x4   :  { %17 = vsyncpa [#allocation4], 0 }
   0x5   :  { %19 = vsyncpa [#allocation4 + $0x1], 0  ;;  %s2024_s24 = smov 0   ;;  %s2026_s25 = smov 0  }
   0x6   :  { %s2028_s26 = smov 0   ;;  %s2030_s27 = smov 0  }
   0x7 LB: > { %s2045_s28 = sadd.s32 4294967295, %s1973_s27   ;;  %s1197_s29 = sadd.s32 4294967294, %s1973_s27   ;;  %s1973_s27 = sphi %s2030_s27, %s2381_s27   ;;  %s1969_s26 = sphi %s2028_s26, %s2380_s26   ;;  %s1965_s25 = sphi %s2026_s25, %s2379_s25   ;;  %s1961_s24 = sphi %s2024_s24, %s2378_s24  }
   0x8   : > { %p45_p0 = scmp.ne.s32.totalorder %s1965_s25, %s1961_s24  ;;  %p2356_p1 = scmp.eq.s32.totalorder %s2045_s28, 0 }
   0x9   : > { %p201_p3 = scmp.eq.s32.totalorder %s1197_s29, 1  ;;  %p1198_p5 = scmp.ge.s32.totalorder %s1973_s27, 1 }
   0xa   : > { %p2054_p4 = por %p2356_p1, %p45_p0  ;;  %p208_p7 = scmp.lt.s32.totalorder %s1973_s27, 3 }
   0xb   : > { %p2059_p6 = por %p201_p3, %p45_p0  ;;  %s1975_s10 = smov [#allocation5]  }
   0xc   : > { %s2360_s30 = scalar_select %p2054_p4, 1, 0 }
   0xd   : > { %s2361_s8 = scalar_select %p2059_p6, 1, 0 }
   0xe   : > { %p2064_p8 = pnand %p1198_p5, %p208_p7  ;;  %s220_s11 = sshll.u32 %s1975_s10, 4  ;;  %s2068_s11 = int_to_ptr.vmem [resolvable:$true] %s220_s11 }
   0xf   : > { %2362 = sst [smem:[#allocation15_spill]] %s2361_s8  ;;  %s1976_s13 = smov [#allocation7]  }
  0x10   : > { %s2363_s9 = scalar_select %p2064_p8, 1, 0 }
  0x11   : > { %p1720_p9 = pneg %p2064_p8  ;;  %s236_s14 = sshll.u32 %s1976_s13, 4  ;;  %s2079_s14 = int_to_ptr.vmem [resolvable:$true] %s236_s14 }
  0x12   : > { %s1977_s15 = smov [#allocation8]   ;;  %s1785_s19 = scalar_lea.hbm %s2349_s1, 2048 }
  0x13   : > { %p2075_p11 = pnand %p1720_p9, %p2356_p1  ;;  %s2081_s16 = sshll.u32 %s1977_s15, 4  ;;  %s253_s16 = int_to_ptr.vmem [resolvable:$true] %s2081_s16 }
  0x14   : > { %p1786_p12 = scmp.ne.s32.totalorder %s2349_s1, %s1785_s19  ;;  %p1792_p5 = scmp.lt.u32.totalorder %s1785_s19, %s2349_s1 }
  0x15   : > { %p2091_p13 = pneg %p2075_p11 }
  0x17   : > { %p1788_p0 = pnand %p2091_p13, %p1786_p12 }
  0x19   : > { %p1789_p3 = pneg %p1788_p0 }
  0x1b   : > { %p1794_p7 = pnand %p1792_p5, %p1789_p3 }
  0x1d   : > { %1797 = shalt.err (!%p1794_p7)
}
  0x1e   : > { %s1798_s10 = scalar_lea.vmem %s2068_s11, 2048  ;;  %p1806_p2 = scmp.lt.s32.totalorder %s2068_s11, %s2068_s11 }
  0x1f   : > { %p1799_p9 = scmp.ne.s32.totalorder %s2068_s11, %s1798_s10  ;;  %p1807_p6 = scmp.lt.s32.totalorder %s1798_s10, %s1798_s10 }
  0x21   : > { %p1801_p10 = pnand %p1799_p9, %p2091_p13  ;;  %p1808_p12 = por %p1807_p6, %p1806_p2 }
  0x23   : > { %p1802_p1 = pneg %p1801_p10 }
  0x25   : > { %p1809_p0 = pnand %p1808_p12, %p1802_p1 }
  0x27   : > { %1812 = shalt.err (!%p1809_p0)
}
  0x28   : > { %s1978_s13 = smov 128   ;;  %s1979_s15 = smov 8  }
  0x29   : > { %1723 = dma.hbm_to_vmem [thread:$0]  (!%p2075_p11), %s2349_s1, 2048, %s2068_s11, [#allocation6], %s1978_s13, %s1978_s13, %s1979_s15  }
  0x2a   : > { %s1813_s21 = scalar_lea.hbm %s2351_s3, 4096 }
  0x2b   : > { %p1814_p1 = scmp.ne.s32.totalorder %s2351_s3, %s1813_s21  ;;  %p1820_p10 = scmp.lt.u32.totalorder %s1813_s21, %s2351_s3 }
  0x2d   : > { %p1816_p2 = pnand %p1814_p1, %p2091_p13 }
  0x2f   : > { %p1817_p6 = pneg %p1816_p2 }
  0x31   : > { %p1822_p3 = pnand %p1820_p10, %p1817_p6 }
  0x33   : > { %1825 = shalt.err (!%p1822_p3)
}
  0x34   : > { %s1826_s11 = scalar_lea.vmem %s2079_s14, 4096  ;;  %p1834_p12 = scmp.lt.s32.totalorder %s2079_s14, %s2079_s14 }
  0x35   : > { %p1827_p5 = scmp.ne.s32.totalorder %s2079_s14, %s1826_s11  ;;  %p1835_p0 = scmp.lt.s32.totalorder %s1826_s11, %s1826_s11 }
  0x37   : > { %p1829_p7 = pnand %p1827_p5, %p2091_p13  ;;  %p1836_p1 = por %p1835_p0, %p1834_p12 }
  0x39   : > { %p1830_p9 = pneg %p1829_p7 }
  0x3b   : > { %p1837_p2 = pnand %p1836_p1, %p1830_p9 }
  0x3d   : > { %1840 = shalt.err (!%p1837_p2)
}
  0x3e   : > { %1726 = dma.hbm_to_vmem [thread:$0]  (!%p2075_p11), %s2351_s3, 4096, %s2079_s14, [#allocation6], %s1978_s13, %s1978_s13, %s1979_s15  }
  0x3f   : > { %s1841_s20 = scalar_lea.hbm %s2353_s5, 2048 }
  0x40   : > { %p1842_p6 = scmp.ne.s32.totalorder %s2353_s5, %s1841_s20  ;;  %p1848_p5 = scmp.lt.u32.totalorder %s1841_s20, %s2353_s5 }
  0x42   : > { %p1844_p10 = pnand %p1842_p6, %p2091_p13 }
  0x44   : > { %p1845_p3 = pneg %p1844_p10 }
  0x46   : > { %p1850_p7 = pnand %p1848_p5, %p1845_p3 }
  0x48   : > { %1853 = shalt.err (!%p1850_p7)
}
  0x49   : > { %s1854_s11 = scalar_lea.vmem %s253_s16, 2048  ;;  %p1862_p1 = scmp.lt.s32.totalorder %s253_s16, %s253_s16 }
  0x4a   : > { %p1855_p9 = scmp.ne.s32.totalorder %s253_s16, %s1854_s11  ;;  %p1863_p2 = scmp.lt.s32.totalorder %s1854_s11, %s1854_s11 }
  0x4c   : > { %p1857_p12 = pnand %p1855_p9, %p2091_p13  ;;  %p1864_p4 = por %p1863_p2, %p1862_p1 }
  0x4e   : > { %p1858_p0 = pneg %p1857_p12 }
  0x50   : > { %p1865_p8 = pnand %p1864_p4, %p1858_p0 }
  0x52   : > { %1868 = shalt.err (!%p1865_p8)
}
  0x53   : > { %1729 = dma.hbm_to_vmem [thread:$0]  (!%p2075_p11), %s2353_s5, 2048, %s253_s16, [#allocation9], %s1978_s13, %s1978_s13, %s1979_s15  }
  0x54   : > { %s2164_s22 = sadd.s32 1, %s1973_s27   ;;  %s32_s17 = sadd.s32 1, %s1969_s26 }
  0x55   : > { %s29_s12 = ssub.s32 %s1973_s27, %s2164_s22  ;;  %p39_p8 = scmp.ne.s32.totalorder %s1969_s26, %s1965_s25 }
  0x56   : > { %p30_p4 = scmp.eq.s32.totalorder %s29_s12, 0  ;;  %p40_p13 = scmp.eq.s32.totalorder %s1973_s27, 0 }
  0x57   : > { %p1741_p6 = scmp.lt.s32.totalorder %s1973_s27, 2  ;;  %p2366_p3 = scmp.eq.s32.totalorder %s2045_s28, 1 }
  0x58   : > { %s2174_s18 = scalar_select %p30_p4, %s1969_s26, %s32_s17  }
  0x59   : > { %p41_p10 = por %p40_p13, %p39_p8  ;;  %p2178_p5 = por %p2366_p3, %p39_p8 }
  0x5a   : > { %s269_s20 = sand.u32 1, %s1969_s26   ;;  %s1222_s21 = sshll.u32 %s1973_s27, 11 }
  0x5b   : > { %s1203_s16 = sshll.u32 %s269_s20, 7  ;;  %s2187_s10 = scalar_lea.hbm %s2348_s0, %s1222_s21 }
  0x5c   : > { %s273_s11 = scalar_lea.vmem [#allocation2], %s1203_s16  ;;  %p2189_p11 = pnand %p1741_p6, %p41_p10 }
  0x5d   : > { %s280_s14 = sshll.u32 %s273_s11, 4  ;;  %s2195_s12 = scalar_lea.sflag [#allocation3], %s269_s20  ;;  %s2193_s14 = int_to_ptr.vmem [resolvable:$true] %s280_s14 }
  0x5e   : > { %s1869_s17 = scalar_lea.hbm %s2187_s10, 2048  ;;  %p1871_p9 = pneg %p2189_p11 }
  0x5f   : > { %p1870_p7 = scmp.ne.s32.totalorder %s2187_s10, %s1869_s17  ;;  %s1874_s23 = scalar_lea.hbm %s2348_s0, 4096 }
  0x60   : > { %p1875_p1 = scmp.lt.u32.totalorder %s2187_s10, %s2348_s0  ;;  %p1876_p2 = scmp.lt.u32.totalorder %s1874_s23, %s1869_s17 }
  0x61   : > { %p1872_p12 = pnand %p1871_p9, %p1870_p7  ;;  %p1878_p8 = scmp.lt.u32.totalorder %s1869_s17, %s2187_s10 }
  0x62   : > { %p1877_p4 = por %p1876_p2, %p1875_p1 }
  0x63   : > { %p1873_p0 = pneg %p1872_p12 }
  0x64   : > { %p1879_p13 = por %p1878_p8, %p1877_p4 }
  0x66   : > { %p1880_p6 = pnand %p1879_p13, %p1873_p0 }
  0x68   : > { %1883 = shalt.err (!%p1880_p6)
}
  0x69   : > { %s1884_s20 = scalar_lea.vmem %s2193_s14, 2048  ;;  %s1980_s21 = smov [#allocation2]  }
  0x6a   : > { %p1885_p10 = scmp.ne.s32.totalorder %s2193_s14, %s1884_s20  ;;  %s1889_s16 = sshll.u32 %s1980_s21, 4  ;;  %s1890_s16 = int_to_ptr.vmem [resolvable:$false] %s1889_s16 }
  0x6b   : > { %s1891_s29 = scalar_lea.vmem %s1890_s16, 4096  ;;  %p1892_p12 = scmp.lt.s32.totalorder %s2193_s14, %s1890_s16 }
  0x6c   : > { %p1887_p3 = pnand %p1885_p10, %p1871_p9  ;;  %p1893_p1 = scmp.lt.s32.totalorder %s1891_s29, %s1884_s20 }
  0x6e   : > { %p1888_p7 = pneg %p1887_p3  ;;  %p1894_p2 = por %p1893_p1, %p1892_p12 }
  0x70   : > { %p1895_p4 = pnand %p1894_p2, %p1888_p7 }
  0x72   : > { %1898 = shalt.err (!%p1895_p4)
}
  0x73   : > { %1733 = dma.hbm_to_vmem [thread:$0]  (!%p2189_p11), %s2187_s10, 2048, %s2193_s14, %s2195_s12, %s1978_s13, %s1978_s13, %s1979_s15  }
  0x74   : > { %p2369_p9 = scmp.ne.s32.totalorder %s2363_s9, 0 }
  0x75   : > { %s2229_s17 = sand.u32 (!%p2369_p9), 1, %s1965_s25   ;;  %p2370_p0 = scmp.ne.s32.totalorder (!%p2369_p9), %s2360_s30, 0 }
  0x76   : > { %292 = sbr.rel (%p2369_p9) target bundleno = 1078 (0x436), region = 48  ;;  %s1207_s23 = sshll.u32 (!%p2369_p9), %s2229_s17, 7 }
  0x77   : > { %s295_s11 = scalar_lea.sflag (!%p2369_p9), [#allocation3], %s2229_s17  ;;  %s2235_s8 = scalar_lea.vmem (!%p2369_p9), [#allocation2], %s1207_s23 }
  0x7d   : > { %1944 = dma.done.wait (%p2370_p0), %s295_s11, 2048  }
  0x7e   : > { %1946 = vsyncadd (%p2370_p0), %s295_s11, 4294965248  ;;  %p2371_p11 = scmp.eq.s32.totalorder %s2045_s28, 0 }
  0x80   : > { %1948 = dma.done.wait (%p2371_p11), [#allocation6], 6144   ;;  %p2372_p8 = pmov %p2371_p11 }
  0x82   : > { %1950 = vsyncadd (%p2372_p8), [#allocation6], 4294961152  ;;  %p2373_p13 = pmov %p2372_p8 }
  0x83   : > { %p2374_p6 = pmov %p2372_p8 }
  0x84   : > { %1952 = dma.done.wait (%p2373_p13), [#allocation9], 2048  }
  0x85   : > { %1954 = vsyncadd (%p2374_p6), [#allocation9], 4294965248  ;;  %v359_v0 = vld [vmem:[#allocation5] sm:$0xff]  ;;  %v360_v1 = vld [vmem:[#allocation5 + $0x8] sm:$0xff]  ;;  %s2279_s21 = scalar_lea.vmem [#allocation10], %s1207_s23  ;;  %s1223_s16 = sshll.u32 %s2045_s28, 11 }
  0x86   : > { %v361_v2 = vld [vmem:[#allocation5 + $0x10] sm:$0xff]  ;;  %v1576_v3 = vpack.c.bf16 %v360_v1, %v359_v0  ;;  %v362_v4 = vld [vmem:[#allocation5 + $0x18] sm:$0xff]  ;;  %v363_v6 = vld [vmem:[#allocation5 + $0x20] sm:$0xff]  ;;  %s1095_s29 = sshll.u32 %s2279_s21, 4  ;;  %s1082_s28 = scalar_lea.sflag [#allocation4], %s2229_s17  ;;  %s2302_s29 = int_to_ptr.vmem [resolvable:$true] %s1095_s29 }
  0x87   : > { %v1580_v5 = vpack.c.bf16 %v362_v4, %v361_v2  ;;  %v364_v7 = vld [vmem:[#allocation5 + $0x28] sm:$0xff]  ;;  %v343_v9 = vld [vmem:[%s2235_s8] sm:$0xff]  ;;  %v365_v10 = vld [vmem:[#allocation5 + $0x30] sm:$0xff]  ;;  %s1899_s30 = scalar_lea.vmem %s2302_s29, 2048  ;;  %s1981_s9 = smov [#allocation10]  }
  0x88   : > { %1577 = vmatprep.subr.bf16.mxu0 %v1576_v3  ;;  %v1584_v8 = vpack.c.bf16 %v364_v7, %v363_v6  ;;  %v366_v11 = vld [vmem:[#allocation5 + $0x38] sm:$0xff]  ;;  %1384 = vmatprep.mubr.f32.mxu0 %v343_v9  ;;  %v367_v13 = vld [vmem:[#allocation5 + $0x40] sm:$0xff]  ;;  %v368_v14 = vld [vmem:[#allocation5 + $0x48] sm:$0xff]  ;;  %p1900_p10 = scmp.ne.s32.totalorder %s2302_s29, %s1899_s30  ;;  %s1903_s13 = sshll.u32 %s1981_s9, 4  ;;  %s1904_s13 = int_to_ptr.vmem [resolvable:$false] %s1903_s13 }
  0x89   : > { %1579 = vmatpush3.bf16.msra.mxu0 %v1576_v3  ;;  %v1588_v12 = vpack.c.bf16 %v366_v11, %v365_v10  ;;  %v527_v15 = vld [vmem:[#allocation7] sm:$0xff]  ;;  %v528_v16 = vld [vmem:[#allocation7 + $0x8] sm:$0xff]  ;;  %v529_v17 = vld [vmem:[#allocation7 + $0x10] sm:$0xff]  ;;  %v1592_v21 = vpack.c.bf16 %v368_v14, %v367_v13  ;;  %s1905_s15 = scalar_lea.vmem %s1904_s13, 4096  ;;  %p1906_p12 = scmp.lt.s32.totalorder %s2302_s29, %s1904_s13 }
  0x8a   : > { %1581 = vmatprep.subr.bf16.mxu0 %v1580_v5  ;;  %v530_v18 = vld [vmem:[#allocation7 + $0x18] sm:$0xff]  ;;  %v1608_v19 = vpack.c.bf16 %v528_v16, %v527_v15  ;;  %v531_v22 = vld [vmem:[#allocation7 + $0x20] sm:$0xff]  ;;  %v532_v23 = vld [vmem:[#allocation7 + $0x28] sm:$0xff]  ;;  %p1901_p3 = pnand %p1900_p10, %p2178_p5  ;;  %p1907_p1 = scmp.lt.s32.totalorder %s1905_s15, %s1899_s30 }
  0x8b   : > { %v1612_v20 = vpack.c.bf16 %v530_v18, %v529_v17  ;;  %v369_v24 = vld [vmem:[#allocation5 + $0x50] sm:$0xff]  ;;  %v370_v25 = vld [vmem:[#allocation5 + $0x58] sm:$0xff]  ;;  %v1616_v26 = vpack.c.bf16 %v532_v23, %v531_v22  ;;  %v371_v30 = vld [vmem:[#allocation5 + $0x60] sm:$0xff] }
  0x8c   : > { %1609 = vmatprep.subr.bf16.mxu1 %v1608_v19  ;;  %v1596_v27 = vpack.c.bf16 %v370_v25, %v369_v24  ;;  %v533_v28 = vld [vmem:[#allocation7 + $0x30] sm:$0xff]  ;;  %v534_v29 = vld [vmem:[#allocation7 + $0x38] sm:$0xff]  ;;  %v372_v31 = vld [vmem:[#allocation5 + $0x68] sm:$0xff]  ;;  %p1902_p7 = pneg %p1901_p3  ;;  %p1908_p2 = por %p1907_p1, %p1906_p12 }
  0x8d   : > { %1583 = vmatpush3.bf16.msra.mxu0 %v1580_v5  ;;  %1611 = vmatpush3.bf16.msra.mxu1 %v1608_v19  ;;  %v1620_v32 = vpack.c.bf16 %v534_v29, %v533_v28  ;;  %v1600_v33 = vpack.c.bf16 %v372_v31, %v371_v30  ;;  %v535_v34 = vld [vmem:[#allocation7 + $0x40] sm:$0xff]  ;;  %v536_v35 = vld [vmem:[#allocation7 + $0x48] sm:$0xff]  ;;  %v373_v36 = vld [vmem:[#allocation5 + $0x70] sm:$0xff] }
  0x8e   : > { %1585 = vmatprep.subr.bf16.mxu0 %v1584_v8  ;;  %1613 = vmatprep.subr.bf16.mxu1 %v1612_v20  ;;  %v374_v37 = vld [vmem:[#allocation5 + $0x78] sm:$0xff]  ;;  %v1624_v38 = vpack.c.bf16 %v536_v35, %v535_v34  ;;  %v537_v40 = vld [vmem:[#allocation7 + $0x50] sm:$0xff]  ;;  %v539_v43 = vld [vmem:[#allocation7 + $0x60] sm:$0xff]  ;;  %p1909_p4 = pnand %p1908_p2, %p1902_p7 }
  0x8f   : > { %v1604_v39 = vpack.c.bf16 %v374_v37, %v373_v36  ;;  %v538_v41 = vld [vmem:[#allocation7 + $0x58] sm:$0xff]  ;;  %v540_v44 = vld [vmem:[#allocation7 + $0x68] sm:$0xff]  ;;  %v345_v47 = vld [vmem:[%s2235_s8 + $0x10] sm:$0xff] }
  0x90   : > { %v1628_v42 = vpack.c.bf16 %v538_v41, %v537_v40  ;;  %v344_v45 = vld [vmem:[%s2235_s8 + $0x8] sm:$0xff]  ;;  %v1632_v46 = vpack.c.bf16 %v540_v44, %v539_v43  ;;  %v346_v48 = vld [vmem:[%s2235_s8 + $0x18] sm:$0xff]  ;;  %v347_v49 = vld [vmem:[%s2235_s8 + $0x20] sm:$0xff] }
  0x91   : > { %1587 = vmatpush3.bf16.msra.mxu0 %v1584_v8  ;;  %1615 = vmatpush3.bf16.msra.mxu1 %v1612_v20  ;;  %v348_v50 = vld [vmem:[%s2235_s8 + $0x28] sm:$0xff]  ;;  %v349_v51 = vld [vmem:[%s2235_s8 + $0x30] sm:$0xff]  ;;  %v350_v52 = vld [vmem:[%s2235_s8 + $0x38] sm:$0xff] }
  0x92   : > { %1589 = vmatprep.subr.bf16.mxu0 %v1588_v12  ;;  %1617 = vmatprep.subr.bf16.mxu1 %v1616_v26  ;;  %v351_v53 = vld [vmem:[%s2235_s8 + $0x40] sm:$0xff]  ;;  %v352_v54 = vld [vmem:[%s2235_s8 + $0x48] sm:$0xff]  ;;  %v353_v55 = vld [vmem:[%s2235_s8 + $0x50] sm:$0xff] }
  0x93   : > { %v354_v56 = vld [vmem:[%s2235_s8 + $0x58] sm:$0xff]  ;;  %v355_v57 = vld [vmem:[%s2235_s8 + $0x60] sm:$0xff]  ;;  %v356_v58 = vld [vmem:[%s2235_s8 + $0x68] sm:$0xff] }
  0x94   : > { %v357_v59 = vld [vmem:[%s2235_s8 + $0x70] sm:$0xff]  ;;  %v358_v60 = vld [vmem:[%s2235_s8 + $0x78] sm:$0xff]  ;;  %v712_v0 = vld [vmem:[#allocation7 + $0x80] sm:$0xff]  ;;  %s2300_s8 = scalar_lea.hbm %s2355_s7, %s1223_s16 }
  0x95   : > { %1591 = vmatpush3.bf16.msra.mxu0 %v1588_v12  ;;  %1619 = vmatpush3.bf16.msra.mxu1 %v1616_v26  ;;  %v541_v61 = vld [vmem:[#allocation7 + $0x70] sm:$0xff]  ;;  %v542_v62 = vld [vmem:[#allocation7 + $0x78] sm:$0xff]  ;;  %v713_v1 = vld [vmem:[#allocation7 + $0x88] sm:$0xff] }
  0x96   : > { %1593 = vmatprep.subr.bf16.mxu0 %v1592_v21  ;;  %1621 = vmatprep.subr.bf16.mxu1 %v1620_v32  ;;  %v1636_v63 = vpack.c.bf16 %v542_v62, %v541_v61  ;;  %v714_v2 = vld [vmem:[#allocation7 + $0x90] sm:$0xff]  ;;  %v1640_v3 = vpack.c.bf16 %v713_v1, %v712_v0  ;;  %v715_v4 = vld [vmem:[#allocation7 + $0x98] sm:$0xff]  ;;  %v716_v6 = vld [vmem:[#allocation7 + $0xa0] sm:$0xff] }
  0x97   : > { %v1644_v5 = vpack.c.bf16 %v715_v4, %v714_v2  ;;  %v717_v7 = vld [vmem:[#allocation7 + $0xa8] sm:$0xff]  ;;  %v718_v9 = vld [vmem:[#allocation7 + $0xb0] sm:$0xff]  ;;  %v719_v10 = vld [vmem:[#allocation7 + $0xb8] sm:$0xff] }
  0x98   : > { %v1648_v8 = vpack.c.bf16 %v717_v7, %v716_v6  ;;  %v1652_v11 = vpack.c.bf16 %v719_v10, %v718_v9  ;;  %v720_v12 = vld [vmem:[#allocation7 + $0xc0] sm:$0xff]  ;;  %v721_v13 = vld [vmem:[#allocation7 + $0xc8] sm:$0xff]  ;;  %v722_v15 = vld [vmem:[#allocation7 + $0xd0] sm:$0xff] }
  0x99   : > { %1595 = vmatpush3.bf16.msra.mxu0 %v1592_v21  ;;  %1623 = vmatpush3.bf16.msra.mxu1 %v1620_v32  ;;  %v1656_v14 = vpack.c.bf16 %v721_v13, %v720_v12  ;;  %v723_v16 = vld [vmem:[#allocation7 + $0xd8] sm:$0xff]  ;;  %v724_v18 = vld [vmem:[#allocation7 + $0xe0] sm:$0xff]  ;;  %v725_v19 = vld [vmem:[#allocation7 + $0xe8] sm:$0xff] }
  0x9a   : > { %1597 = vmatprep.subr.bf16.mxu0 %v1596_v27  ;;  %1625 = vmatprep.subr.bf16.mxu1 %v1624_v38  ;;  %v1660_v17 = vpack.c.bf16 %v723_v16, %v722_v15  ;;  %v1664_v20 = vpack.c.bf16 %v725_v19, %v724_v18  ;;  %v1212_v21 = vld [vmem:[%s2350_s2] ss:$0 sm:$0xff]  ;;  %v900_v61 = vld [vmem:[#allocation8 + $0x18] sm:$0xff]  ;;  %v902_v0 = vld [vmem:[#allocation8 + $0x28] sm:$0xff] }
  0x9b   : > { %v903_v2 = vld [vmem:[#allocation8 + $0x30] sm:$0xff]  ;;  %v906_v6 = vld [vmem:[#allocation8 + $0x48] sm:$0xff]  ;;  %v908_v9 = vld [vmem:[#allocation8 + $0x58] sm:$0xff] }
  0x9c   : > { %v910_v12 = vld [vmem:[#allocation8 + $0x68] sm:$0xff] }
  0x9d   : > { %1599 = vmatpush3.bf16.msra.mxu0 %v1596_v27  ;;  %1627 = vmatpush3.bf16.msra.mxu1 %v1624_v38 }
  0x9e   : > { %1601 = vmatprep.subr.bf16.mxu0 %v1600_v33  ;;  %1629 = vmatprep.subr.bf16.mxu1 %v1628_v42 }
  0xa1   : > { %1603 = vmatpush3.bf16.msra.mxu0 %v1600_v33  ;;  %1631 = vmatpush3.bf16.msra.mxu1 %v1628_v42 }
  0xa2   : > { %1605 = vmatprep.subr.bf16.mxu0 %v1604_v39  ;;  %1633 = vmatprep.subr.bf16.mxu1 %v1632_v46 }
  0xa5   : > { %1607 = vmatpush3.bf16.msra.mxu0 %v1604_v39  ;;  %1635 = vmatpush3.bf16.msra.mxu1 %v1632_v46 }
  0xa6   : > { %1637 = vmatprep.subr.bf16.mxu1 %v1636_v63  ;;  %1641 = vmatprep.subr.bf16.mxu0 %v1640_v3 }
  0xa8   : > { %1385 = vmatmul.mubr.f32.vlgmr.msra.gmra.mrb[0].mxu0 %v344_v45 }
  0xa9   : > { %1387 = vmatprep.mubr.f32.mxu0 %v345_v47  ;;  %1639 = vmatpush3.bf16.msra.mxu1 %v1636_v63  ;;  %v901_v63 = vld [vmem:[#allocation8 + $0x20] sm:$0xff] }
  0xaa   : > { %1643 = vmatpush3.bf16.msra.mxu0 %v1640_v3  ;;  %v1680_v1 = vpack.c.bf16 %v902_v0, %v901_v63  ;;  %v904_v3 = vld [vmem:[#allocation8 + $0x38] sm:$0xff]  ;;  %v911_v63 = vld [vmem:[#allocation8 + $0x70] sm:$0xff] }
  0xab   : > { %1645 = vmatprep.subr.bf16.mxu0 %v1644_v5  ;;  %v1684_v4 = vpack.c.bf16 %v904_v3, %v903_v2  ;;  %v912_v0 = vld [vmem:[#allocation8 + $0x78] sm:$0xff]  ;;  %v1215_v2 = vld [vmem:[%s2352_s4 + $0x1] ss:$0 sm:$0xff] }
  0xac   : > { %1388 = vmatmul.mubr.f32.gmra.mrb[2].mxu0 %v346_v48 }
  0xad   : > { %1390 = vmatprep.mubr.f32.mxu0 %v347_v49 }
  0xae   : > { %1647 = vmatpush3.bf16.msra.mxu0 %v1644_v5  ;;  %v905_v5 = vld [vmem:[#allocation8 + $0x40] sm:$0xff] }
  0xaf   : > { %1649 = vmatprep.subr.bf16.mxu0 %v1648_v8  ;;  %v1688_v7 = vpack.c.bf16 %v906_v6, %v905_v5 }
  0xb0   : > { %1391 = vmatmul.mubr.f32.gmra.mrb[4].mxu0 %v348_v50 }
  0xb1   : > { %1393 = vmatprep.mubr.f32.mxu0 %v349_v51 }
  0xb2   : > { %1651 = vmatpush3.bf16.msra.mxu0 %v1648_v8  ;;  %v907_v8 = vld [vmem:[#allocation8 + $0x50] sm:$0xff] }
  0xb3   : > { %1653 = vmatprep.subr.bf16.mxu0 %v1652_v11  ;;  %v1692_v10 = vpack.c.bf16 %v908_v9, %v907_v8 }
  0xb4   : > { %1394 = vmatmul.mubr.f32.gmra.mrb[6].mxu0 %v350_v52 }
  0xb5   : > { %1396 = vmatprep.mubr.f32.mxu0 %v351_v53 }
  0xb6   : > { %1655 = vmatpush3.bf16.msra.mxu0 %v1652_v11  ;;  %v909_v11 = vld [vmem:[#allocation8 + $0x60] sm:$0xff] }
  0xb7   : > { %1657 = vmatprep.subr.bf16.mxu0 %v1656_v14  ;;  %v1696_v13 = vpack.c.bf16 %v910_v12, %v909_v11 }
  0xb8   : > { %1397 = vmatmul.mubr.f32.gmra.mrb[8].mxu0 %v352_v54  ;;  %v726_v54 = vld [vmem:[#allocation7 + $0xf0] sm:$0xff] }
  0xb9   : > { %1399 = vmatprep.mubr.f32.mxu0 %v353_v55  ;;  %v727_v55 = vld [vmem:[#allocation7 + $0xf8] sm:$0xff] }
  0xba   : > { %1659 = vmatpush3.bf16.msra.mxu0 %v1656_v14  ;;  %v1213_v14 = vld [vmem:[%s2352_s4] ss:$0 sm:$0xff] }
  0xbb   : > { %1661 = vmatprep.subr.bf16.mxu0 %v1660_v17 }
  0xbc   : > { %1400 = vmatmul.mubr.f32.gmra.mrb[10].mxu0 %v354_v56  ;;  %v1668_v56 = vpack.c.bf16 %v727_v55, %v726_v54 }
  0xbd   : > { %1402 = vmatprep.mubr.f32.mxu0 %v355_v57  ;;  %v897_v57 = vld [vmem:[#allocation8] sm:$0xff] }
  0xbe   : > { %1663 = vmatpush3.bf16.msra.mxu0 %v1660_v17 }
  0xbf   : > { %1665 = vmatprep.subr.bf16.mxu0 %v1664_v20 }
  0xc0   : > { %1403 = vmatmul.mubr.f32.gmra.mrb[12].mxu0 %v356_v58  ;;  %v898_v58 = vld [vmem:[#allocation8 + $0x8] sm:$0xff] }
  0xc1   : > { %1405 = vmatprep.mubr.f32.mxu0 %v357_v59  ;;  %v899_v59 = vld [vmem:[#allocation8 + $0x10] sm:$0xff] }
  0xc2   : > { %1667 = vmatpush3.bf16.msra.mxu0 %v1664_v20  ;;  %v1676_v62 = vpack.c.bf16 %v900_v61, %v899_v59 }
  0xc3   : > { %1669 = vmatprep.subr.bf16.mxu0 %v1668_v56 }
  0xc4   : > { %1406 = vmatmul.mubr.f32.gmra.mrb[14].mxu0 %v358_v60  ;;  %v1672_v60 = vpack.c.bf16 %v898_v58, %v897_v57 }
  0xc6   : > { %1671 = vmatpush3.bf16.msra.mxu0 %v1668_v56  ;;  %1673 = vmatprep.subr.bf16.mxu1 %v1672_v60 }
 0x17b   : > { %v1386_v22 = vpop.f32.mrb[0].mxu0 }
 0x17c   : > { %v448_v23 = vpop.f32.mrb[1].mxu0  ;;  %v454_v25 = vadd.f32 %v1386_v22, %v1212_v21 }
 0x17d   : > { %v449_v24 = vadd.f32 %v1212_v21, %v448_v23 }
 0x17f   : > { %v1389_v26 = vpop.f32.mrb[2].mxu0  ;;  %1440 = vmatprep.mubr.f32.mxu1 %v449_v24 }
 0x180   : > { %v458_v27 = vpop.f32.mrb[3].mxu0  ;;  %1441 = vmatmul.mubr.f32.vlgmr.msra.gmra.mrb[0].mxu1 %v454_v25  ;;  %v464_v29 = vadd.f32 %v1389_v26, %v1212_v21 }
 0x181   : > { %v459_v28 = vadd.f32 %v1212_v21, %v458_v27  ;;  %1675 = vmatpush3.bf16.msra.mxu1 %v1672_v60 }
 0x182   : > { %1677 = vmatprep.subr.bf16.mxu1 %v1676_v62 }
 0x183   : > { %v1392_v30 = vpop.f32.mrb[4].mxu0  ;;  %1443 = vmatprep.mubr.f32.mxu1 %v459_v28 }
 0x184   : > { %v468_v31 = vpop.f32.mrb[5].mxu0  ;;  %1444 = vmatmul.mubr.f32.gmra.mrb[2].mxu1 %v464_v29  ;;  %v474_v33 = vadd.f32 %v1392_v30, %v1212_v21 }
 0x185   : > { %v469_v32 = vadd.f32 %v1212_v21, %v468_v31  ;;  %1679 = vmatpush3.bf16.msra.mxu1 %v1676_v62 }
 0x186   : > { %1681 = vmatprep.subr.bf16.mxu1 %v1680_v1 }
 0x187   : > { %v1395_v34 = vpop.f32.mrb[6].mxu0  ;;  %1446 = vmatprep.mubr.f32.mxu1 %v469_v32 }
 0x188   : > { %v478_v35 = vpop.f32.mrb[7].mxu0  ;;  %1447 = vmatmul.mubr.f32.gmra.mrb[4].mxu1 %v474_v33  ;;  %v484_v37 = vadd.f32 %v1395_v34, %v1212_v21 }
 0x189   : > { %v479_v36 = vadd.f32 %v1212_v21, %v478_v35  ;;  %1683 = vmatpush3.bf16.msra.mxu1 %v1680_v1  ;;  %v1700_v1 = vpack.c.bf16 %v912_v0, %v911_v63 }
 0x18a   : > { %1685 = vmatprep.subr.bf16.mxu1 %v1684_v4 }
 0x18b   : > { %v1398_v38 = vpop.f32.mrb[8].mxu0  ;;  %1449 = vmatprep.mubr.f32.mxu1 %v479_v36 }
 0x18c   : > { %v488_v39 = vpop.f32.mrb[9].mxu0  ;;  %1450 = vmatmul.mubr.f32.gmra.mrb[6].mxu1 %v484_v37  ;;  %v494_v41 = vadd.f32 %v1398_v38, %v1212_v21 }
 0x18d   : > { %v489_v40 = vadd.f32 %v1212_v21, %v488_v39  ;;  %1687 = vmatpush3.bf16.msra.mxu1 %v1684_v4 }
 0x18e   : > { %1689 = vmatprep.subr.bf16.mxu1 %v1688_v7 }
 0x18f   : > { %v1401_v42 = vpop.f32.mrb[10].mxu0  ;;  %1452 = vmatprep.mubr.f32.mxu1 %v489_v40 }
 0x190   : > { %v498_v43 = vpop.f32.mrb[11].mxu0  ;;  %1453 = vmatmul.mubr.f32.gmra.mrb[8].mxu1 %v494_v41  ;;  %v504_v45 = vadd.f32 %v1401_v42, %v1212_v21 }
 0x191   : > { %v499_v44 = vadd.f32 %v1212_v21, %v498_v43  ;;  %1691 = vmatpush3.bf16.msra.mxu1 %v1688_v7 }
 0x192   : > { %1693 = vmatprep.subr.bf16.mxu1 %v1692_v10 }
 0x193   : > { %v1404_v46 = vpop.f32.mrb[12].mxu0  ;;  %1455 = vmatprep.mubr.f32.mxu1 %v499_v44 }
 0x194   : > { %v508_v47 = vpop.f32.mrb[13].mxu0  ;;  %1456 = vmatmul.mubr.f32.gmra.mrb[10].mxu1 %v504_v45  ;;  %v514_v49 = vadd.f32 %v1404_v46, %v1212_v21 }
 0x195   : > { %v509_v48 = vadd.f32 %v1212_v21, %v508_v47  ;;  %1695 = vmatpush3.bf16.msra.mxu1 %v1692_v10 }
 0x196   : > { %1697 = vmatprep.subr.bf16.mxu1 %v1696_v13 }
 0x197   : > { %v1407_v50 = vpop.f32.mrb[14].mxu0  ;;  %1458 = vmatprep.mubr.f32.mxu1 %v509_v48 }
 0x198   : > { %v518_v51 = vpop.f32.mrb[15].mxu0  ;;  %1459 = vmatmul.mubr.f32.gmra.mrb[12].mxu1 %v514_v49  ;;  %v524_v53 = vadd.f32 %v1407_v50, %v1212_v21 }
 0x199   : > { %v519_v52 = vadd.f32 %v1212_v21, %v518_v51  ;;  %1699 = vmatpush3.bf16.msra.mxu1 %v1696_v13 }
 0x19a   : > { %1701 = vmatprep.subr.bf16.mxu1 %v1700_v1 }
 0x19b   : > { %1461 = vmatprep.mubr.f32.mxu1 %v519_v52 }
 0x19c   : > { %1462 = vmatmul.mubr.f32.gmra.mrb[14].mxu1 %v524_v53 }
 0x19d   : > { %1703 = vmatpush3.bf16.msra.mxu1 %v1700_v1 }
 0x253   : > { %v1442_v15 = vpop.f32.mrb[0].mxu1 }
 0x254   : > { %v622_v16 = vadd.f32 %v1442_v15, %v1213_v14  ;;  %v616_v17 = vpop.f32.mrb[1].mxu1 }
 0x255   : > { %v617_v18 = vadd.f32 %v1213_v14, %v616_v17 }
 0x256   : > { %v696_v21 = vmax.f32 %v622_v16, 0.0 }
 0x257   : > { %v695_v19 = vmax.f32 %v617_v18, 0.0  ;;  %v1445_v20 = vpop.f32.mrb[2].mxu1 }
 0x258   : > { %v632_v22 = vadd.f32 %v1445_v20, %v1213_v14  ;;  %v626_v23 = vpop.f32.mrb[3].mxu1 }
 0x259   : > { %v627_v24 = vadd.f32 %v1213_v14, %v626_v23  ;;  %1496 = vmatprep.mubr.f32.mxu0 %v695_v19 }
 0x25a   : > { %1497 = vmatmul.mubr.f32.vlgmr.msra.gmra.mrb[16].mxu0 %v696_v21  ;;  %v698_v27 = vmax.f32 %v632_v22, 0.0 }
 0x25b   : > { %v697_v25 = vmax.f32 %v627_v24, 0.0  ;;  %v1448_v26 = vpop.f32.mrb[4].mxu1 }
 0x25c   : > { %v642_v28 = vadd.f32 %v1448_v26, %v1213_v14  ;;  %v636_v29 = vpop.f32.mrb[5].mxu1 }
 0x25d   : > { %v637_v30 = vadd.f32 %v1213_v14, %v636_v29  ;;  %1499 = vmatprep.mubr.f32.mxu0 %v697_v25 }
 0x25e   : > { %1500 = vmatmul.mubr.f32.gmra.mrb[18].mxu0 %v698_v27  ;;  %v700_v33 = vmax.f32 %v642_v28, 0.0 }
 0x25f   : > { %v699_v31 = vmax.f32 %v637_v30, 0.0  ;;  %v1451_v32 = vpop.f32.mrb[6].mxu1 }
 0x260   : > { %v652_v34 = vadd.f32 %v1451_v32, %v1213_v14  ;;  %v646_v35 = vpop.f32.mrb[7].mxu1 }
 0x261   : > { %v647_v36 = vadd.f32 %v1213_v14, %v646_v35  ;;  %1502 = vmatprep.mubr.f32.mxu0 %v699_v31 }
 0x262   : > { %1503 = vmatmul.mubr.f32.gmra.mrb[20].mxu0 %v700_v33  ;;  %v702_v39 = vmax.f32 %v652_v34, 0.0 }
 0x263   : > { %v701_v37 = vmax.f32 %v647_v36, 0.0  ;;  %v1454_v38 = vpop.f32.mrb[8].mxu1 }
 0x264   : > { %v662_v40 = vadd.f32 %v1454_v38, %v1213_v14  ;;  %v656_v41 = vpop.f32.mrb[9].mxu1 }
 0x265   : > { %v657_v42 = vadd.f32 %v1213_v14, %v656_v41  ;;  %1505 = vmatprep.mubr.f32.mxu0 %v701_v37 }
 0x266   : > { %1506 = vmatmul.mubr.f32.gmra.mrb[22].mxu0 %v702_v39  ;;  %v704_v45 = vmax.f32 %v662_v40, 0.0 }
 0x267   : > { %v703_v43 = vmax.f32 %v657_v42, 0.0  ;;  %v1457_v44 = vpop.f32.mrb[10].mxu1 }
 0x268   : > { %v672_v46 = vadd.f32 %v1457_v44, %v1213_v14  ;;  %v666_v47 = vpop.f32.mrb[11].mxu1 }
 0x269   : > { %v667_v48 = vadd.f32 %v1213_v14, %v666_v47  ;;  %1508 = vmatprep.mubr.f32.mxu0 %v703_v43 }
 0x26a   : > { %1509 = vmatmul.mubr.f32.gmra.mrb[24].mxu0 %v704_v45  ;;  %v706_v51 = vmax.f32 %v672_v46, 0.0 }
 0x26b   : > { %v705_v49 = vmax.f32 %v667_v48, 0.0  ;;  %v1460_v50 = vpop.f32.mrb[12].mxu1 }
 0x26c   : > { %v682_v52 = vadd.f32 %v1460_v50, %v1213_v14  ;;  %v676_v53 = vpop.f32.mrb[13].mxu1 }
 0x26d   : > { %v677_v54 = vadd.f32 %v1213_v14, %v676_v53  ;;  %1511 = vmatprep.mubr.f32.mxu0 %v705_v49 }
 0x26e   : > { %1512 = vmatmul.mubr.f32.gmra.mrb[26].mxu0 %v706_v51  ;;  %v708_v57 = vmax.f32 %v682_v52, 0.0  ;;  %v1216_v51 = vld [vmem:[%s2354_s6] ss:$0 sm:$0xff] }
 0x26f   : > { %v707_v55 = vmax.f32 %v677_v54, 0.0  ;;  %v1463_v56 = vpop.f32.mrb[14].mxu1 }
 0x270   : > { %v692_v58 = vadd.f32 %v1463_v56, %v1213_v14  ;;  %v686_v59 = vpop.f32.mrb[15].mxu1 }
 0x271   : > { %v687_v60 = vadd.f32 %v1213_v14, %v686_v59  ;;  %1514 = vmatprep.mubr.f32.mxu0 %v707_v55 }
 0x272   : > { %1515 = vmatmul.mubr.f32.gmra.mrb[28].mxu0 %v708_v57  ;;  %v710_v62 = vmax.f32 %v692_v58, 0.0 }
 0x273   : > { %v709_v61 = vmax.f32 %v687_v60, 0.0 }
 0x275   : > { %1517 = vmatprep.mubr.f32.mxu0 %v709_v61 }
 0x276   : > { %1518 = vmatmul.mubr.f32.gmra.mrb[30].mxu0 %v710_v62 }
 0x32d   : > { %v1498_v3 = vpop.f32.mrb[16].mxu0 }
 0x32e   : > { %v808_v4 = vadd.f32 %v1498_v3, %v1215_v2  ;;  %v802_v5 = vpop.f32.mrb[17].mxu0 }
 0x32f   : > { %v803_v6 = vadd.f32 %v1215_v2, %v802_v5 }
 0x330   : > { %v882_v9 = vmax.f32 %v808_v4, 0.0 }
 0x331   : > { %v881_v7 = vmax.f32 %v803_v6, 0.0  ;;  %v1501_v8 = vpop.f32.mrb[18].mxu0 }
 0x332   : > { %v818_v10 = vadd.f32 %v1501_v8, %v1215_v2  ;;  %v812_v11 = vpop.f32.mrb[19].mxu0 }
 0x333   : > { %v813_v12 = vadd.f32 %v1215_v2, %v812_v11  ;;  %1552 = vmatprep.mubr.f32.mxu1 %v881_v7 }
 0x334   : > { %1553 = vmatmul.mubr.f32.vlgmr.msra.gmra.mrb[16].mxu1 %v882_v9  ;;  %v884_v15 = vmax.f32 %v818_v10, 0.0 }
 0x335   : > { %v883_v13 = vmax.f32 %v813_v12, 0.0  ;;  %v1504_v14 = vpop.f32.mrb[20].mxu0 }
 0x336   : > { %v828_v16 = vadd.f32 %v1504_v14, %v1215_v2  ;;  %v822_v17 = vpop.f32.mrb[21].mxu0 }
 0x337   : > { %v823_v18 = vadd.f32 %v1215_v2, %v822_v17  ;;  %1555 = vmatprep.mubr.f32.mxu1 %v883_v13 }
 0x338   : > { %1556 = vmatmul.mubr.f32.gmra.mrb[18].mxu1 %v884_v15  ;;  %v886_v21 = vmax.f32 %v828_v16, 0.0 }
 0x339   : > { %v885_v19 = vmax.f32 %v823_v18, 0.0  ;;  %v1507_v20 = vpop.f32.mrb[22].mxu0 }
 0x33a   : > { %v838_v22 = vadd.f32 %v1507_v20, %v1215_v2  ;;  %v832_v23 = vpop.f32.mrb[23].mxu0 }
 0x33b   : > { %v833_v24 = vadd.f32 %v1215_v2, %v832_v23  ;;  %1558 = vmatprep.mubr.f32.mxu1 %v885_v19 }
 0x33c   : > { %1559 = vmatmul.mubr.f32.gmra.mrb[20].mxu1 %v886_v21  ;;  %v888_v27 = vmax.f32 %v838_v22, 0.0 }
 0x33d   : > { %v887_v25 = vmax.f32 %v833_v24, 0.0  ;;  %v1510_v26 = vpop.f32.mrb[24].mxu0 }
 0x33e   : > { %v848_v28 = vadd.f32 %v1510_v26, %v1215_v2  ;;  %v842_v29 = vpop.f32.mrb[25].mxu0 }
 0x33f   : > { %v843_v30 = vadd.f32 %v1215_v2, %v842_v29  ;;  %1561 = vmatprep.mubr.f32.mxu1 %v887_v25 }
 0x340   : > { %1562 = vmatmul.mubr.f32.gmra.mrb[22].mxu1 %v888_v27  ;;  %v890_v33 = vmax.f32 %v848_v28, 0.0 }
 0x341   : > { %v889_v31 = vmax.f32 %v843_v30, 0.0  ;;  %v1513_v32 = vpop.f32.mrb[26].mxu0 }
 0x342   : > { %v858_v34 = vadd.f32 %v1513_v32, %v1215_v2  ;;  %v852_v35 = vpop.f32.mrb[27].mxu0 }
 0x343   : > { %v853_v36 = vadd.f32 %v1215_v2, %v852_v35  ;;  %1564 = vmatprep.mubr.f32.mxu1 %v889_v31 }
 0x344   : > { %1565 = vmatmul.mubr.f32.gmra.mrb[24].mxu1 %v890_v33  ;;  %v892_v39 = vmax.f32 %v858_v34, 0.0 }
 0x345   : > { %v891_v37 = vmax.f32 %v853_v36, 0.0  ;;  %v1516_v38 = vpop.f32.mrb[28].mxu0 }
 0x346   : > { %v868_v40 = vadd.f32 %v1516_v38, %v1215_v2  ;;  %v862_v41 = vpop.f32.mrb[29].mxu0 }
 0x347   : > { %v863_v42 = vadd.f32 %v1215_v2, %v862_v41  ;;  %1567 = vmatprep.mubr.f32.mxu1 %v891_v37 }
 0x348   : > { %1568 = vmatmul.mubr.f32.gmra.mrb[26].mxu1 %v892_v39  ;;  %v894_v45 = vmax.f32 %v868_v40, 0.0 }
 0x349   : > { %v893_v43 = vmax.f32 %v863_v42, 0.0  ;;  %v1519_v44 = vpop.f32.mrb[30].mxu0 }
 0x34a   : > { %v878_v46 = vadd.f32 %v1519_v44, %v1215_v2  ;;  %v872_v47 = vpop.f32.mrb[31].mxu0 }
 0x34b   : > { %v873_v48 = vadd.f32 %v1215_v2, %v872_v47  ;;  %1570 = vmatprep.mubr.f32.mxu1 %v893_v43 }
 0x34c   : > { %1571 = vmatmul.mubr.f32.gmra.mrb[28].mxu1 %v894_v45  ;;  %v896_v50 = vmax.f32 %v878_v46, 0.0 }
 0x34d   : > { %v895_v49 = vmax.f32 %v873_v48, 0.0 }
 0x34f   : > { %1573 = vmatprep.mubr.f32.mxu1 %v895_v49 }
 0x350   : > { %1574 = vmatmul.mubr.f32.gmra.mrb[30].mxu1 %v896_v50 }
 0x407   : > { %v1554_v52 = vpop.f32.mrb[16].mxu1 }
 0x408   : > { %v992_v53 = vadd.f32 %v1554_v52, %v1216_v51  ;;  %v986_v54 = vpop.f32.mrb[17].mxu1 }
 0x409   : > { %v987_v55 = vadd.f32 %v1216_v51, %v986_v54 }
 0x40a   : > { %1066 = vst [vmem:[%s2279_s21 + $0x8] sm:$0xff] %v992_v53 }
 0x40b   : > { %1065 = vst [vmem:[%s2279_s21] sm:$0xff] %v987_v55  ;;  %v1557_v56 = vpop.f32.mrb[18].mxu1 }
 0x40c   : > { %v1002_v57 = vadd.f32 %v1557_v56, %v1216_v51  ;;  %v996_v58 = vpop.f32.mrb[19].mxu1 }
 0x40d   : > { %v997_v59 = vadd.f32 %v1216_v51, %v996_v58 }
 0x40e   : > { %1068 = vst [vmem:[%s2279_s21 + $0x18] sm:$0xff] %v1002_v57 }
 0x40f   : > { %1067 = vst [vmem:[%s2279_s21 + $0x10] sm:$0xff] %v997_v59  ;;  %v1560_v60 = vpop.f32.mrb[20].mxu1 }
 0x410   : > { %v1012_v61 = vadd.f32 %v1560_v60, %v1216_v51  ;;  %v1006_v62 = vpop.f32.mrb[21].mxu1 }
 0x411   : > { %v1007_v63 = vadd.f32 %v1216_v51, %v1006_v62 }
 0x412   : > { %1070 = vst [vmem:[%s2279_s21 + $0x28] sm:$0xff] %v1012_v61 }
 0x413   : > { %1069 = vst [vmem:[%s2279_s21 + $0x20] sm:$0xff] %v1007_v63  ;;  %v1563_v0 = vpop.f32.mrb[22].mxu1 }
 0x414   : > { %v1022_v1 = vadd.f32 %v1563_v0, %v1216_v51  ;;  %v1016_v2 = vpop.f32.mrb[23].mxu1 }
 0x415   : > { %v1017_v3 = vadd.f32 %v1216_v51, %v1016_v2 }
 0x416   : > { %1072 = vst [vmem:[%s2279_s21 + $0x38] sm:$0xff] %v1022_v1 }
 0x417   : > { %1071 = vst [vmem:[%s2279_s21 + $0x30] sm:$0xff] %v1017_v3  ;;  %v1566_v4 = vpop.f32.mrb[24].mxu1 }
 0x418   : > { %v1032_v5 = vadd.f32 %v1566_v4, %v1216_v51  ;;  %v1026_v6 = vpop.f32.mrb[25].mxu1 }
 0x419   : > { %v1027_v7 = vadd.f32 %v1216_v51, %v1026_v6 }
 0x41a   : > { %1074 = vst [vmem:[%s2279_s21 + $0x48] sm:$0xff] %v1032_v5 }
 0x41b   : > { %1073 = vst [vmem:[%s2279_s21 + $0x40] sm:$0xff] %v1027_v7  ;;  %v1569_v8 = vpop.f32.mrb[26].mxu1 }
 0x41c   : > { %v1042_v9 = vadd.f32 %v1569_v8, %v1216_v51  ;;  %v1036_v10 = vpop.f32.mrb[27].mxu1 }
 0x41d   : > { %v1037_v11 = vadd.f32 %v1216_v51, %v1036_v10 }
 0x41e   : > { %1076 = vst [vmem:[%s2279_s21 + $0x58] sm:$0xff] %v1042_v9 }
 0x41f   : > { %1075 = vst [vmem:[%s2279_s21 + $0x50] sm:$0xff] %v1037_v11  ;;  %v1572_v12 = vpop.f32.mrb[28].mxu1 }
 0x420   : > { %v1052_v13 = vadd.f32 %v1572_v12, %v1216_v51  ;;  %v1046_v14 = vpop.f32.mrb[29].mxu1 }
 0x421   : > { %v1047_v15 = vadd.f32 %v1216_v51, %v1046_v14 }
 0x422   : > { %1078 = vst [vmem:[%s2279_s21 + $0x68] sm:$0xff] %v1052_v13 }
 0x423   : > { %1077 = vst [vmem:[%s2279_s21 + $0x60] sm:$0xff] %v1047_v15  ;;  %v1575_v16 = vpop.f32.mrb[30].mxu1 }
 0x424   : > { %v1062_v17 = vadd.f32 %v1575_v16, %v1216_v51  ;;  %v1056_v18 = vpop.f32.mrb[31].mxu1 }
 0x425   : > { %v1057_v19 = vadd.f32 %v1216_v51, %v1056_v18 }
 0x426   : > { %1080 = vst [vmem:[%s2279_s21 + $0x78] sm:$0xff] %v1062_v17 }
 0x427   : > { %1079 = vst [vmem:[%s2279_s21 + $0x70] sm:$0xff] %v1057_v19 }
 0x428   : > { %1912 = shalt.err (!%p1909_p4)
}
 0x429   : > { %s1913_s10 = scalar_lea.hbm %s2300_s8, 2048  ;;  %s1917_s20 = scalar_lea.hbm %s2355_s7, 4096 }
 0x42a   : > { %p1914_p9 = scmp.ne.s32.totalorder %s2300_s8, %s1913_s10  ;;  %p1918_p8 = scmp.lt.u32.totalorder %s2300_s8, %s2355_s7 }
 0x42b   : > { %p1919_p13 = scmp.lt.u32.totalorder %s1917_s20, %s1913_s10  ;;  %p1921_p10 = scmp.lt.u32.totalorder %s1913_s10, %s2300_s8 }
 0x42c   : > { %p1915_p0 = pnand %p1914_p9, %p2178_p5 }
 0x42d   : > { %p1920_p6 = por %p1919_p13, %p1918_p8 }
 0x42e   : > { %p1916_p11 = pneg %p1915_p0 }
 0x42f   : > { %p1922_p3 = por %p1921_p10, %p1920_p6 }
 0x431   : > { %p1923_p7 = pnand %p1922_p3, %p1916_p11 }
 0x433   : > { %1926 = shalt.err (!%p1923_p7)
}
 0x434   : > { %s1982_s23 = smov 128   ;;  %s1983_s11 = smov 8  }
 0x435   : > { %1718 = dma.vmem_to_hbm [thread:$0]  (%p2178_p5), %s2302_s29, 2048, %s2300_s8, %s1082_s28, %s1982_s23, %s1982_s23, %s1983_s11  }
 0x436 PF: > { %s2375_s30 = sld [smem:[#allocation15_spill]]  ;;  %s1110_s9 = sand.u32 1, %s1961_s24  }
 0x437   : > { %p2377_p1 = scmp.ge.s32.totalorder %s1973_s27, 2  ;;  %s1111_s13 = scalar_lea.sflag [#allocation4], %s1110_s9 }
 0x43c   : > { %p2376_p12 = scmp.ne.s32.totalorder %s2375_s30, 0 }
 0x43e   : > { %p1735_p2 = pnand %p2377_p1, %p2376_p12 }
 0x440   : > { %1956 = dma.done.wait (!%p1735_p2), %s1111_s13, 2048  }
 0x441   : > { %1958 = vsyncadd (!%p1735_p2), %s1111_s13, 4294965248  ;;  %p22_p4 = scmp.ge.s32.totalorder %s2164_s22, 4   ;;  %s2378_s24 = smov %s1965_s25 }
 0x442   : > { %s2379_s25 = smov %s1969_s26  ;;  %s2380_s26 = smov %s2174_s18 }
 0x443   : > { %s2381_s27 = smov %s2164_s22  ;;  %24 = sbr.rel (!%p22_p4) target bundleno = 7 (0x7), region = 107 }
 0x44a   :  { %1116 = vsyncpa [#allocation3], 1 }
 0x44b   :  { %1118 = vsyncpa [#allocation3 + $0x1], 1 }
 0x44c   :  { %1119 = vsyncpa [#allocation6], 1 }
 0x44d   :  { %1120 = vsyncpa [#allocation9], 1 }
 0x44e   :  { %1121 = vsyncpa [#allocation4], 1 }
 0x44f   :  { %1123 = vsyncpa [#allocation4 + $0x1], 1 }

</bundles_post_ra>
